<compile_context>
chip_gen: v6e
topology: v6e:2x2x1
jax: 0.10.0
libtpu: 0.0.40
codegen_flags: <defaults>
</compile_context>

<pallas_src>
import jax
import jax.numpy as jnp
from jax.experimental import pallas as pl
from jax.experimental.pallas import tpu as pltpu


def _rep_spec(arr):
    """BlockSpec for a small weight that stays fully resident every grid step."""
    nd = arr.ndim
    return pl.BlockSpec(arr.shape, lambda b, _nd=nd: (0,) * _nd)


# ------------------------------------------ fused MLP + arc/rel biaffine head
def _fused_head_kernel(x_ref,
                       w_ad_ref, w_ah_ref, w_rd_ref, w_rh_ref,
                       b_ad_ref, b_ah_ref, b_rd_ref, b_rh_ref,
                       wa_m_ref, wa_b_ref,
                       wr_m_ref, wr_bx_ref, wr_y_ref, wr_by_ref,
                       o_arc_ref, o_rel_ref):
    x = x_ref[0]                                                   # [N, H]

    def proj(w_ref, b_ref):
        # supar MLP: Linear + LeakyReLU(0.1)
        y = jnp.dot(x, w_ref[...], preferred_element_type=jnp.float32) + b_ref[...]
        return jnp.where(y >= 0.0, y, 0.1 * y)

    arc_d = proj(w_ad_ref, b_ad_ref)                               # [N, Da]
    arc_h = proj(w_ah_ref, b_ah_ref)                               # [N, Da]
    rel_d = proj(w_rd_ref, b_rd_ref)                               # [N, Dr]
    rel_h = proj(w_rh_ref, b_rh_ref)                               # [N, Dr]

    # ---- arc biaffine, bias_x folded:  t = d @ W[:Da] + W[Da]
    t_a = jnp.dot(arc_d, wa_m_ref[...],
                  preferred_element_type=jnp.float32) + wa_b_ref[...]
    o_arc_ref[0] = jax.lax.dot_general(
        t_a, arc_h, (((1,), (1,)), ((), ())),
        preferred_element_type=jnp.float32)                        # [N, N]

    # ---- rel biaffine: all R relations fused, bias_x / bias_y folded.
    R = wr_m_ref.shape[0]
    rel_d_b = jnp.broadcast_to(rel_d[None], (R,) + rel_d.shape)    # [R, N, Dr]
    rel_h_b = jnp.broadcast_to(rel_h[None], (R,) + rel_h.shape)    # [R, N, Dr]
    # T[r,i,l] = sum_k d[i,k] W[r,k,l] + W[r,Dr,l]
    t_r = jnp.einsum('rnd,rdl->rnl', rel_d_b, wr_m_ref[...],
                     preferred_element_type=jnp.float32) + wr_bx_ref[...]
    # S[r,i,j] = sum_l T[r,i,l] h[j,l]   (batched over r, heads j lane-dense)
    s_r = jnp.einsum('rnl,rml->rnm', t_r, rel_h_b,
                     preferred_element_type=jnp.float32)           # [R, N, N]
    # bias_y column: Ty[r,i] = sum_k d[i,k] W[r,k,Dr] + W[r,Dr,Dr]
    t_y = jax.lax.dot_general(wr_y_ref[...], rel_d, (((1,), (1,)), ((), ())),
                              preferred_element_type=jnp.float32) + wr_by_ref[...]
    o_rel_ref[0] = s_r + t_y[:, :, None]                           # [R, N, N]


def fused_biaffine_head(hidden, w_ad, w_ah, w_rd, w_rh, b_ad, b_ah, b_rd, b_rh,
                        wa_m, wa_b, wr_m, wr_bx, wr_y, wr_by):
    B, N, H = hidden.shape
    Da = w_ad.shape[1]
    Dr = w_rd.shape[1]
    R = wr_m.shape[0]

    flops = B * (2 * N * H * (2 * Da + 2 * Dr)                        # 4 MLP projections
                 + 2 * N * Da * Da + 2 * N * N * Da                    # arc biaffine
                 + 2 * R * N * Dr * Dr + 2 * R * N * N * Dr + 2 * R * N * Dr)  # rel biaffine
    bytes_accessed = 4 * (B * N * H + B * N * N + B * R * N * N
                          + H * (2 * Da + 2 * Dr) + (Da + 1) * Da
                          + R * (Dr + 1) * (Dr + 1))

    weight_args = (w_ad, w_ah, w_rd, w_rh, b_ad, b_ah, b_rd, b_rh,
                   wa_m, wa_b, wr_m, wr_bx, wr_y, wr_by)
    return pl.pallas_call(
        _fused_head_kernel,
        out_shape=(jax.ShapeDtypeStruct((B, N, N), jnp.float32),
                   jax.ShapeDtypeStruct((B, R, N, N), jnp.float32)),
        grid=(B,),
        in_specs=[pl.BlockSpec((1, N, H), lambda b: (b, 0, 0))]
                 + [_rep_spec(w) for w in weight_args],
        out_specs=(pl.BlockSpec((1, N, N), lambda b: (b, 0, 0)),
                   pl.BlockSpec((1, R, N, N), lambda b: (b, 0, 0, 0))),
        compiler_params=pltpu.CompilerParams(
            dimension_semantics=("parallel",),
            vmem_limit_bytes=32 * 1024 * 1024),
        cost_estimate=pl.CostEstimate(flops=flops, transcendentals=0,
                                      bytes_accessed=bytes_accessed),
    )(hidden, *weight_args)


# --------------------------------------------------------- partial CE loss
def _loss_kernel(s_arc_ref, s_rel_ref, arcs_ref, rels_ref, o_ref,
                 acc_arc, acc_rel, acc_cnt):
    b = pl.program_id(0)

    @pl.when(b == 0)
    def _():
        acc_arc[...] = jnp.zeros_like(acc_arc)
        acc_rel[...] = jnp.zeros_like(acc_rel)
        acc_cnt[...] = jnp.zeros_like(acc_cnt)

    s_arc = s_arc_ref[0]                 # [N, N]
    s_rel = s_rel_ref[0]                 # [R, N, N]  (pre-permute layout)
    arcs = arcs_ref[0]                   # [N, 1] int32
    rels = rels_ref[0]                   # [N, 1] int32
    N = s_arc.shape[0]
    R = s_rel.shape[0]

    maskf = (arcs >= 0).astype(jnp.float32)                  # [N, 1]  (partial=True)
    safe_arcs = jnp.where(arcs >= 0, arcs, 0)
    safe_rels = jnp.where(rels >= 0, rels, 0)

    col_n = jax.lax.broadcasted_iota(jnp.int32, (N, N), 1)
    onehot_arc = (col_n == safe_arcs).astype(jnp.float32)    # [N, N]

    # arc cross-entropy (log-sum-exp over the head/lane axis), masked
    m = jnp.max(s_arc, axis=-1, keepdims=True)
    lse = m + jnp.log(jnp.sum(jnp.exp(s_arc - m), axis=-1, keepdims=True))
    picked = jnp.sum(s_arc * onehot_arc, axis=-1, keepdims=True)
    arc_nll = maskf * (lse - picked)                          # [N, 1]

    # gold-head gather in [R, N, N] layout: lane-axis reduction over heads j
    s_rel_g = jnp.transpose(jnp.sum(s_rel * onehot_arc[None, :, :], axis=-1))  # [N, R]
    col_r = jax.lax.broadcasted_iota(jnp.int32, (N, R), 1)
    onehot_rel = (col_r == safe_rels).astype(jnp.float32)
    m_r = jnp.max(s_rel_g, axis=-1, keepdims=True)
    lse_r = m_r + jnp.log(jnp.sum(jnp.exp(s_rel_g - m_r), axis=-1, keepdims=True))
    picked_r = jnp.sum(s_rel_g * onehot_rel, axis=-1, keepdims=True)
    rel_nll = maskf * (lse_r - picked_r)                      # [N, 1]

    acc_arc[...] += jnp.sum(arc_nll, keepdims=True)
    acc_rel[...] += jnp.sum(rel_nll, keepdims=True)
    acc_cnt[...] += jnp.sum(maskf, keepdims=True)

    @pl.when(b == pl.num_programs(0) - 1)
    def _():
        cnt = jnp.maximum(acc_cnt[...], 1.0)
        # mean arc CE + mean rel CE over the same mask (supar partial loss)
        o_ref[...] = (acc_arc[...] + acc_rel[...]) / cnt


def biaffine_loss(s_arc, s_rel_rnn, labels_arcs, labels_rels):
    """s_rel_rnn is consumed in the pre-permute [B, R, N, N] layout."""
    B, N, _ = s_arc.shape
    R = s_rel_rnn.shape[1]
    arcs = labels_arcs.astype(jnp.int32)[..., None]   # [B, N, 1]
    rels = labels_rels.astype(jnp.int32)[..., None]

    flops = B * (6 * N * N + 4 * R * N * N + 8 * N * R + 16 * N)
    bytes_accessed = 4 * B * (N * N + R * N * N + 2 * N) + 4
    loss = pl.pallas_call(
        _loss_kernel,
        out_shape=jax.ShapeDtypeStruct((1, 1), jnp.float32),
        grid=(B,),
        in_specs=[pl.BlockSpec((1, N, N), lambda b: (b, 0, 0)),
                  pl.BlockSpec((1, R, N, N), lambda b: (b, 0, 0, 0)),
                  pl.BlockSpec((1, N, 1), lambda b: (b, 0, 0)),
                  pl.BlockSpec((1, N, 1), lambda b: (b, 0, 0))],
        out_specs=pl.BlockSpec((1, 1), lambda b: (0, 0)),
        scratch_shapes=[pltpu.VMEM((1, 1), jnp.float32),
                        pltpu.VMEM((1, 1), jnp.float32),
                        pltpu.VMEM((1, 1), jnp.float32)],
        compiler_params=pltpu.CompilerParams(
            # MUST stay sequential: the VMEM accumulators carry across batches
            # and the output block is only written on the last grid step.
            dimension_semantics=("arbitrary",),
            vmem_limit_bytes=32 * 1024 * 1024),
        cost_estimate=pl.CostEstimate(flops=flops,
                                      transcendentals=B * N * (N + R),
                                      bytes_accessed=bytes_accessed),
    )(s_arc, s_rel_rnn, arcs, rels)
    return loss[0, 0]


# ------------------------------------------------------------------- glue
def init_params(key, vocab, H, Da, Dr, R):
    k1, k2, k3, k4 = jax.random.split(key, 4)
    return {
        "embed": 0.02 * jax.random.normal(k1, (vocab, H), jnp.float32),
        "w_mlp": 0.05 * jax.random.normal(k2, (H, 2 * Da + 2 * Dr), jnp.float32),
        "b_mlp": jnp.zeros((1, 2 * Da + 2 * Dr), jnp.float32),
        "w_arc": 0.1 * jax.random.normal(k3, (Da + 1, Da), jnp.float32),
        "w_rel": 0.1 * jax.random.normal(k4, (R, Dr + 1, Dr + 1), jnp.float32),
    }


def encode(params, words):
    # TODO(synk): full HF transformer encoder replaced by embedding + mean subword pooling.
    emb = params["embed"][words]                              # [B, N, S, H]
    sub_mask = (words != 0).astype(jnp.float32)[..., None]
    return jnp.sum(emb * sub_mask, axis=2) / jnp.maximum(
        jnp.sum(sub_mask, axis=2), 1.0)                       # [B, N, H]


def supar_forward(params, words, labels_arcs=None, labels_rels=None):
    B, N, _ = words.shape
    Da = params["w_arc"].shape[1]
    Dr = params["w_rel"].shape[2] - 1
    R = params["w_rel"].shape[0]

    hidden = encode(params, words)                            # [B, N, H]

    # One-time static weight splits (tiny tensors):
    #  * aligned per-head MLP projections -> no feats slab + no lane-offset slices
    #  * biaffine bias_x / bias_y rows/columns separated -> no `ones` concats over
    #    [B, N, *] activations and no K = Da+1 / Dr+1 contractions.
    w_mlp, b_mlp = params["w_mlp"], params["b_mlp"]
    w_ad, w_ah = w_mlp[:, :Da], w_mlp[:, Da:2 * Da]
    w_rd, w_rh = w_mlp[:, 2 * Da:2 * Da + Dr], w_mlp[:, 2 * Da + Dr:]
    b_ad, b_ah = b_mlp[:, :Da], b_mlp[:, Da:2 * Da]
    b_rd, b_rh = b_mlp[:, 2 * Da:2 * Da + Dr], b_mlp[:, 2 * Da + Dr:]

    w_arc = params["w_arc"]                                   # [Da+1, Da]
    wa_m, wa_b = w_arc[:Da, :], w_arc[Da:, :]                 # [Da, Da], [1, Da]

    w_rel = params["w_rel"]                                   # [R, Dr+1, Dr+1]
    wr_m = w_rel[:, :Dr, :Dr]                                 # [R, Dr, Dr]
    wr_bx = w_rel[:, Dr:Dr + 1, :Dr]                          # [R, 1, Dr]
    wr_y = w_rel[:, :Dr, Dr]                                  # [R, Dr]
    wr_by = w_rel[:, Dr, Dr].reshape(R, 1)                    # [R, 1]

    arc_scores, rel_rnn = fused_biaffine_head(
        hidden, w_ad, w_ah, w_rd, w_rh, b_ad, b_ah, b_rd, b_rh,
        wa_m, wa_b, wr_m, wr_bx, wr_y, wr_by)                 # [B,N,N], [B,R,N,N]

    loss = None
    if labels_arcs is not None and labels_rels is not None:
        # The loss reads the pre-permute [B, R, N, N] layout directly:
        # no HBM transpose on the loss path, lane-axis gold-head gather.
        loss = biaffine_loss(arc_scores, rel_rnn, labels_arcs, labels_rels)

    # supar returns s_rel.permute(0, 2, 3, 1); apply the permute only to the
    # returned logits: [B, R, N, N] -> [B, N, N, R].
    rel_scores = jnp.transpose(rel_rnn, (0, 2, 3, 1))

    if loss is None:
        return arc_scores, rel_scores
    return loss, arc_scores, rel_scores


# ---------------------------------------------------------- pure-JAX reference
def reference_forward(params, words, labels_arcs, labels_rels):
    B, N, _ = words.shape
    H = params["embed"].shape[1]
    Da = params["w_arc"].shape[1]
    Dr = params["w_rel"].shape[2] - 1
    hidden = encode(params, words)
    pre = hidden.reshape(B * N, H) @ params["w_mlp"] + params["b_mlp"]
    feats = jnp.where(pre >= 0, pre, 0.1 * pre).reshape(B, N, -1)
    arc_d, arc_h = feats[..., :Da], feats[..., Da:2 * Da]
    rel_d, rel_h = feats[..., 2 * Da:2 * Da + Dr], feats[..., 2 * Da + Dr:]
    ones = jnp.ones((B, N, 1), jnp.float32)
    arc_d_b = jnp.concatenate([arc_d, ones], axis=-1)
    rel_d_b = jnp.concatenate([rel_d, ones], axis=-1)
    rel_h_b = jnp.concatenate([rel_h, ones], axis=-1)
    s_arc = jnp.einsum("bxi,ij,byj->bxy", arc_d_b, params["w_arc"], arc_h)
    s_rel = jnp.einsum("bxi,oij,byj->boxy", rel_d_b, params["w_rel"],
                       rel_h_b).transpose(0, 2, 3, 1)

    mask = labels_arcs >= 0
    safe_a = jnp.where(mask, labels_arcs, 0)
    safe_r = jnp.where(labels_rels >= 0, labels_rels, 0)
    logp_a = jax.nn.log_softmax(s_arc, axis=-1)
    arc_nll = -jnp.take_along_axis(logp_a, safe_a[..., None], axis=-1)[..., 0]
    s_rel_g = jnp.take_along_axis(s_rel, safe_a[..., None, None], axis=2)[:, :, 0, :]
    logp_r = jax.nn.log_softmax(s_rel_g, axis=-1)
    rel_nll = -jnp.take_along_axis(logp_r, safe_r[..., None], axis=-1)[..., 0]
    cnt = jnp.maximum(jnp.sum(mask), 1)
    loss = (jnp.sum(jnp.where(mask, arc_nll, 0.0))
            + jnp.sum(jnp.where(mask, rel_nll, 0.0))) / cnt
    return loss, s_arc, s_rel


if __name__ == "__main__":
    B, N, S = 2, 8, 4          # batch, words (incl. dummy root), subwords
    V, H = 64, 32              # vocab, hidden
    Da, Dr, R = 32, 16, 8      # arc MLP dim, rel MLP dim, number of relations

    key = jax.random.PRNGKey(0)
    kp, kw, ka, kr = jax.random.split(key, 4)
    params = init_params(kp, V, H, Da, Dr, R)

    words = jax.random.randint(kw, (B, N, S), 1, V, dtype=jnp.int32)
    # pad out the last subword slot of some words
    words = words.at[:, :, S - 1].set(jnp.where(words[:, :, S - 1] % 2 == 0, 0,
                                                words[:, :, S - 1]))
    labels_arcs = jax.random.randint(ka, (B, N), 0, N, dtype=jnp.int32)
    labels_rels = jax.random.randint(kr, (B, N), 0, R, dtype=jnp.int32)
    # dummy root head is masked out with -100 (ignored by the partial loss)
    labels_arcs = labels_arcs.at[:, 0].set(-100)
    labels_rels = labels_rels.at[:, 0].set(-100)

    loss, arc_scores, rel_scores = supar_forward(params, words, labels_arcs, labels_rels)
    jax.block_until_ready((loss, arc_scores, rel_scores))

    ref_loss, ref_arc, ref_rel = reference_forward(params, words, labels_arcs, labels_rels)
    assert arc_scores.shape == (B, N, N) and rel_scores.shape == (B, N, N, R)
    assert jnp.allclose(arc_scores, ref_arc, rtol=1e-4, atol=1e-4)
    assert jnp.allclose(rel_scores, ref_rel, rtol=1e-4, atol=1e-4)
    assert jnp.allclose(loss, ref_loss, rtol=1e-4, atol=1e-4)

    print("KERNEL_OK")
</pallas_src>

<mosaic_0001>
module attributes {stable_mosaic.version = 11 : i64} {
  func.func @_fused_head_kernel(%arg0: i32, %arg1: memref<1x8x32xf32, #tpu.memory_space<vmem>>, %arg2: memref<32x32xf32, #tpu.memory_space<vmem>>, %arg3: memref<32x32xf32, #tpu.memory_space<vmem>>, %arg4: memref<32x16xf32, #tpu.memory_space<vmem>>, %arg5: memref<32x16xf32, #tpu.memory_space<vmem>>, %arg6: memref<1x32xf32, #tpu.memory_space<vmem>>, %arg7: memref<1x32xf32, #tpu.memory_space<vmem>>, %arg8: memref<1x16xf32, #tpu.memory_space<vmem>>, %arg9: memref<1x16xf32, #tpu.memory_space<vmem>>, %arg10: memref<32x32xf32, #tpu.memory_space<vmem>>, %arg11: memref<1x32xf32, #tpu.memory_space<vmem>>, %arg12: memref<8x16x16xf32, #tpu.memory_space<vmem>>, %arg13: memref<8x1x16xf32, #tpu.memory_space<vmem>>, %arg14: memref<8x16xf32, #tpu.memory_space<vmem>>, %arg15: memref<8x1xf32, #tpu.memory_space<vmem>>, %arg16: memref<1x8x8xf32, #tpu.memory_space<vmem>>, %arg17: memref<1x8x8x8xf32, #tpu.memory_space<vmem>>) attributes {dimension_semantics = [#tpu.dimension_semantics<parallel>], iteration_bounds = array<i64: 2>, scalar_prefetch = 0 : i64, scratch_operands = 0 : i64, tpu.core_type = #tpu.core_type<tc>, window_params = [{transform_indices = @transform_0, window_bounds = array<i64: 1, 8, 32>}, {pipeline_mode = #tpu.pipeline_mode<synchronous>, transform_indices = @transform_1, window_bounds = array<i64: 32, 32>}, {pipeline_mode = #tpu.pipeline_mode<synchronous>, transform_indices = @transform_2, window_bounds = array<i64: 32, 32>}, {pipeline_mode = #tpu.pipeline_mode<synchronous>, transform_indices = @transform_3, window_bounds = array<i64: 32, 16>}, {pipeline_mode = #tpu.pipeline_mode<synchronous>, transform_indices = @transform_4, window_bounds = array<i64: 32, 16>}, {pipeline_mode = #tpu.pipeline_mode<synchronous>, transform_indices = @transform_5, window_bounds = array<i64: 1, 32>}, {pipeline_mode = #tpu.pipeline_mode<synchronous>, transform_indices = @transform_6, window_bounds = array<i64: 1, 32>}, {pipeline_mode = #tpu.pipeline_mode<synchronous>, transform_indices = @transform_7, window_bounds = array<i64: 1, 16>}, {pipeline_mode = #tpu.pipeline_mode<synchronous>, transform_indices = @transform_8, window_bounds = array<i64: 1, 16>}, {pipeline_mode = #tpu.pipeline_mode<synchronous>, transform_indices = @transform_9, window_bounds = array<i64: 32, 32>}, {pipeline_mode = #tpu.pipeline_mode<synchronous>, transform_indices = @transform_10, window_bounds = array<i64: 1, 32>}, {pipeline_mode = #tpu.pipeline_mode<synchronous>, transform_indices = @transform_11, window_bounds = array<i64: 8, 16, 16>}, {pipeline_mode = #tpu.pipeline_mode<synchronous>, transform_indices = @transform_12, window_bounds = array<i64: 8, 1, 16>}, {pipeline_mode = #tpu.pipeline_mode<synchronous>, transform_indices = @transform_13, window_bounds = array<i64: 8, 16>}, {pipeline_mode = #tpu.pipeline_mode<synchronous>, transform_indices = @transform_14, window_bounds = array<i64: 8, 1>}, {transform_indices = @transform_15, window_bounds = array<i64: 1, 8, 8>}, {transform_indices = @transform_16, window_bounds = array<i64: 1, 8, 8, 8>}]} {
    %c0 = arith.constant 0 : index
    %c0_0 = arith.constant 0 : index
    %c0_1 = arith.constant 0 : index
    %0 = vector.load %arg1[%c0, %c0_0, %c0_1] : memref<1x8x32xf32, #tpu.memory_space<vmem>>, vector<1x8x32xf32>
    %1 = vector.shape_cast %0 : vector<1x8x32xf32> to vector<8x32xf32>
    %c0_2 = arith.constant 0 : index
    %c0_3 = arith.constant 0 : index
    %2 = vector.load %arg2[%c0_2, %c0_3] : memref<32x32xf32, #tpu.memory_space<vmem>>, vector<32x32xf32>
    %cst = arith.constant dense<0.000000e+00> : vector<8x32xf32>
    %3 = tpu.matmul %1, %2, %cst {dimension_numbers = #tpu.dot_dimension_numbers<[1], [0], [0], [1], [0, 0, 1, 1], [], []>} : vector<8x32xf32>, vector<32x32xf32>, vector<8x32xf32> -> vector<8x32xf32>
    %c0_4 = arith.constant 0 : index
    %c0_5 = arith.constant 0 : index
    %4 = vector.load %arg6[%c0_4, %c0_5] : memref<1x32xf32, #tpu.memory_space<vmem>>, vector<1x32xf32>
    %5 = vector.broadcast %4 : vector<1x32xf32> to vector<8x32xf32>
    %6 = arith.addf %3, %5 : vector<8x32xf32>
    %cst_6 = arith.constant 0.000000e+00 : f32
    %7 = vector.broadcast %cst_6 : f32 to vector<8x32xf32>
    %8 = arith.cmpf oge, %6, %7 : vector<8x32xf32>
    %cst_7 = arith.constant 1.000000e-01 : f32
    %9 = vector.broadcast %cst_7 : f32 to vector<8x32xf32>
    %10 = arith.mulf %9, %6 : vector<8x32xf32>
    %11 = arith.select %8, %6, %10 : vector<8x32xi1>, vector<8x32xf32>
    %c0_8 = arith.constant 0 : index
    %c0_9 = arith.constant 0 : index
    %12 = vector.load %arg3[%c0_8, %c0_9] : memref<32x32xf32, #tpu.memory_space<vmem>>, vector<32x32xf32>
    %cst_10 = arith.constant dense<0.000000e+00> : vector<8x32xf32>
    %13 = tpu.matmul %1, %12, %cst_10 {dimension_numbers = #tpu.dot_dimension_numbers<[1], [0], [0], [1], [0, 0, 1, 1], [], []>} : vector<8x32xf32>, vector<32x32xf32>, vector<8x32xf32> -> vector<8x32xf32>
    %c0_11 = arith.constant 0 : index
    %c0_12 = arith.constant 0 : index
    %14 = vector.load %arg7[%c0_11, %c0_12] : memref<1x32xf32, #tpu.memory_space<vmem>>, vector<1x32xf32>
    %15 = vector.broadcast %14 : vector<1x32xf32> to vector<8x32xf32>
    %16 = arith.addf %13, %15 : vector<8x32xf32>
    %cst_13 = arith.constant 0.000000e+00 : f32
    %17 = vector.broadcast %cst_13 : f32 to vector<8x32xf32>
    %18 = arith.cmpf oge, %16, %17 : vector<8x32xf32>
    %cst_14 = arith.constant 1.000000e-01 : f32
    %19 = vector.broadcast %cst_14 : f32 to vector<8x32xf32>
    %20 = arith.mulf %19, %16 : vector<8x32xf32>
    %21 = arith.select %18, %16, %20 : vector<8x32xi1>, vector<8x32xf32>
    %c0_15 = arith.constant 0 : index
    %c0_16 = arith.constant 0 : index
    %22 = vector.load %arg4[%c0_15, %c0_16] : memref<32x16xf32, #tpu.memory_space<vmem>>, vector<32x16xf32>
    %cst_17 = arith.constant dense<0.000000e+00> : vector<8x16xf32>
    %23 = tpu.matmul %1, %22, %cst_17 {dimension_numbers = #tpu.dot_dimension_numbers<[1], [0], [0], [1], [0, 0, 1, 1], [], []>} : vector<8x32xf32>, vector<32x16xf32>, vector<8x16xf32> -> vector<8x16xf32>
    %c0_18 = arith.constant 0 : index
    %c0_19 = arith.constant 0 : index
    %24 = vector.load %arg8[%c0_18, %c0_19] : memref<1x16xf32, #tpu.memory_space<vmem>>, vector<1x16xf32>
    %25 = vector.broadcast %24 : vector<1x16xf32> to vector<8x16xf32>
    %26 = arith.addf %23, %25 : vector<8x16xf32>
    %cst_20 = arith.constant 0.000000e+00 : f32
    %27 = vector.broadcast %cst_20 : f32 to vector<8x16xf32>
    %28 = arith.cmpf oge, %26, %27 : vector<8x16xf32>
    %cst_21 = arith.constant 1.000000e-01 : f32
    %29 = vector.broadcast %cst_21 : f32 to vector<8x16xf32>
    %30 = arith.mulf %29, %26 : vector<8x16xf32>
    %31 = arith.select %28, %26, %30 : vector<8x16xi1>, vector<8x16xf32>
    %c0_22 = arith.constant 0 : index
    %c0_23 = arith.constant 0 : index
    %32 = vector.load %arg5[%c0_22, %c0_23] : memref<32x16xf32, #tpu.memory_space<vmem>>, vector<32x16xf32>
    %cst_24 = arith.constant dense<0.000000e+00> : vector<8x16xf32>
    %33 = tpu.matmul %1, %32, %cst_24 {dimension_numbers = #tpu.dot_dimension_numbers<[1], [0], [0], [1], [0, 0, 1, 1], [], []>} : vector<8x32xf32>, vector<32x16xf32>, vector<8x16xf32> -> vector<8x16xf32>
    %c0_25 = arith.constant 0 : index
    %c0_26 = arith.constant 0 : index
    %34 = vector.load %arg9[%c0_25, %c0_26] : memref<1x16xf32, #tpu.memory_space<vmem>>, vector<1x16xf32>
    %35 = vector.broadcast %34 : vector<1x16xf32> to vector<8x16xf32>
    %36 = arith.addf %33, %35 : vector<8x16xf32>
    %cst_27 = arith.constant 0.000000e+00 : f32
    %37 = vector.broadcast %cst_27 : f32 to vector<8x16xf32>
    %38 = arith.cmpf oge, %36, %37 : vector<8x16xf32>
    %cst_28 = arith.constant 1.000000e-01 : f32
    %39 = vector.broadcast %cst_28 : f32 to vector<8x16xf32>
    %40 = arith.mulf %39, %36 : vector<8x16xf32>
    %41 = arith.select %38, %36, %40 : vector<8x16xi1>, vector<8x16xf32>
    %c0_29 = arith.constant 0 : index
    %c0_30 = arith.constant 0 : index
    %42 = vector.load %arg10[%c0_29, %c0_30] : memref<32x32xf32, #tpu.memory_space<vmem>>, vector<32x32xf32>
    %cst_31 = arith.constant dense<0.000000e+00> : vector<8x32xf32>
    %43 = tpu.matmul %11, %42, %cst_31 {dimension_numbers = #tpu.dot_dimension_numbers<[1], [0], [0], [1], [0, 0, 1, 1], [], []>} : vector<8x32xf32>, vector<32x32xf32>, vector<8x32xf32> -> vector<8x32xf32>
    %c0_32 = arith.constant 0 : index
    %c0_33 = arith.constant 0 : index
    %44 = vector.load %arg11[%c0_32, %c0_33] : memref<1x32xf32, #tpu.memory_space<vmem>>, vector<1x32xf32>
    %45 = vector.broadcast %44 : vector<1x32xf32> to vector<8x32xf32>
    %46 = arith.addf %43, %45 : vector<8x32xf32>
    %cst_34 = arith.constant dense<0.000000e+00> : vector<8x8xf32>
    %47 = tpu.matmul %46, %21, %cst_34 {dimension_numbers = #tpu.dot_dimension_numbers<[1], [1], [0], [0], [0, 0, 1, 0], [], []>} : vector<8x32xf32>, vector<8x32xf32>, vector<8x8xf32> -> vector<8x8xf32>
    %c0_35 = arith.constant 0 : index
    %c0_36 = arith.constant 0 : index
    %c0_37 = arith.constant 0 : index
    %48 = vector.load %arg16[%c0_35, %c0_36, %c0_37] : memref<1x8x8xf32, #tpu.memory_space<vmem>>, vector<1x8x8xf32>
    %49 = vector.shape_cast %48 : vector<1x8x8xf32> to vector<8x8xf32>
    %50 = vector.shape_cast %47 : vector<8x8xf32> to vector<1x8x8xf32>
    tpu.vector_store %arg16[%c0_35, %c0_36, %c0_37], %50 {strides = array<i32>} : memref<1x8x8xf32, #tpu.memory_space<vmem>>, vector<1x8x8xf32>,
    %51 = vector.shape_cast %31 : vector<8x16xf32> to vector<1x8x16xf32>
    %52 = vector.shape_cast %51 : vector<1x8x16xf32> to vector<1x8x16xf32>
    %53 = vector.broadcast %52 : vector<1x8x16xf32> to vector<8x8x16xf32>
    %54 = vector.shape_cast %41 : vector<8x16xf32> to vector<1x8x16xf32>
    %55 = vector.shape_cast %54 : vector<1x8x16xf32> to vector<1x8x16xf32>
    %56 = vector.broadcast %55 : vector<1x8x16xf32> to vector<8x8x16xf32>
    %c0_38 = arith.constant 0 : index
    %c0_39 = arith.constant 0 : index
    %c0_40 = arith.constant 0 : index
    %57 = vector.load %arg12[%c0_38, %c0_39, %c0_40] : memref<8x16x16xf32, #tpu.memory_space<vmem>>, vector<8x16x16xf32>
    "tpu.trace_start"() <{level = 10 : i32, message = "rnd,rdl->rnl"}> : () -> ()
    %cst_41 = arith.constant dense<0.000000e+00> : vector<8x8x16xf32>
    %58 = tpu.matmul %53, %57, %cst_41 {dimension_numbers = #tpu.dot_dimension_numbers<[2], [1], [1], [2], [0, 0, 0, 1, 1, 2], [0], [0]>} : vector<8x8x16xf32>, vector<8x16x16xf32>, vector<8x8x16xf32> -> vector<8x8x16xf32>
    "tpu.trace_stop"() : () -> ()
    %c0_42 = arith.constant 0 : index
    %c0_43 = arith.constant 0 : index
    %c0_44 = arith.constant 0 : index
    %59 = vector.load %arg13[%c0_42, %c0_43, %c0_44] : memref<8x1x16xf32, #tpu.memory_space<vmem>>, vector<8x1x16xf32>
    %60 = vector.broadcast %59 : vector<8x1x16xf32> to vector<8x8x16xf32>
    %61 = arith.addf %58, %60 : vector<8x8x16xf32>
    "tpu.trace_start"() <{level = 10 : i32, message = "rnl,rml->rnm"}> : () -> ()
    %cst_45 = arith.constant dense<0.000000e+00> : vector<8x8x8xf32>
    %62 = tpu.matmul %61, %56, %cst_45 {dimension_numbers = #tpu.dot_dimension_numbers<[2], [2], [1], [1], [0, 0, 0, 1, 1, 1], [0], [0]>} : vector<8x8x16xf32>, vector<8x8x16xf32>, vector<8x8x8xf32> -> vector<8x8x8xf32>
    "tpu.trace_stop"() : () -> ()
    %c0_46 = arith.constant 0 : index
    %c0_47 = arith.constant 0 : index
    %63 = vector.load %arg14[%c0_46, %c0_47] : memref<8x16xf32, #tpu.memory_space<vmem>>, vector<8x16xf32>
    %cst_48 = arith.constant dense<0.000000e+00> : vector<8x8xf32>
    %64 = tpu.matmul %63, %31, %cst_48 {dimension_numbers = #tpu.dot_dimension_numbers<[1], [1], [0], [0], [0, 0, 1, 0], [], []>} : vector<8x16xf32>, vector<8x16xf32>, vector<8x8xf32> -> vector<8x8xf32>
    %c0_49 = arith.constant 0 : index
    %c0_50 = arith.constant 0 : index
    %65 = vector.load %arg15[%c0_49, %c0_50] : memref<8x1xf32, #tpu.memory_space<vmem>>, vector<8x1xf32>
    %66 = vector.broadcast %65 : vector<8x1xf32> to vector<8x8xf32>
    %67 = arith.addf %64, %66 : vector<8x8xf32>
    %68 = vector.shape_cast %67 : vector<8x8xf32> to vector<8x8x1xf32>
    %69 = vector.broadcast %68 : vector<8x8x1xf32> to vector<8x8x8xf32>
    %70 = arith.addf %62, %69 : vector<8x8x8xf32>
    %c0_51 = arith.constant 0 : index
    %c0_52 = arith.constant 0 : index
    %c0_53 = arith.constant 0 : index
    %c0_54 = arith.constant 0 : index
    %71 = vector.load %arg17[%c0_51, %c0_52, %c0_53, %c0_54] : memref<1x8x8x8xf32, #tpu.memory_space<vmem>>, vector<1x8x8x8xf32>
    %72 = vector.shape_cast %71 : vector<1x8x8x8xf32> to vector<8x8x8xf32>
    %73 = vector.shape_cast %70 : vector<8x8x8xf32> to vector<1x8x8x8xf32>
    tpu.vector_store %arg17[%c0_51, %c0_52, %c0_53, %c0_54], %73 {strides = array<i32>} : memref<1x8x8x8xf32, #tpu.memory_space<vmem>>, vector<1x8x8x8xf32>,
    return
  }
  func.func @transform_0(%arg0: i32) -> (i32, i32, i32) {
    %c0_i32 = arith.constant 0 : i32
    %c0_i32_0 = arith.constant 0 : i32
    %c0_i32_1 = arith.constant 0 : i32
    return %arg0, %c0_i32, %c0_i32_0 : i32, i32, i32
  }
  func.func @transform_1(%arg0: i32) -> (i32, i32) {
    %c0_i32 = arith.constant 0 : i32
    %c0_i32_0 = arith.constant 0 : i32
    %c0_i32_1 = arith.constant 0 : i32
    return %c0_i32, %c0_i32_0 : i32, i32
  }
  func.func @transform_2(%arg0: i32) -> (i32, i32) {
    %c0_i32 = arith.constant 0 : i32
    %c0_i32_0 = arith.constant 0 : i32
    %c0_i32_1 = arith.constant 0 : i32
    return %c0_i32, %c0_i32_0 : i32, i32
  }
  func.func @transform_3(%arg0: i32) -> (i32, i32) {
    %c0_i32 = arith.constant 0 : i32
    %c0_i32_0 = arith.constant 0 : i32
    %c0_i32_1 = arith.constant 0 : i32
    return %c0_i32, %c0_i32_0 : i32, i32
  }
  func.func @transform_4(%arg0: i32) -> (i32, i32) {
    %c0_i32 = arith.constant 0 : i32
    %c0_i32_0 = arith.constant 0 : i32
    %c0_i32_1 = arith.constant 0 : i32
    return %c0_i32, %c0_i32_0 : i32, i32
  }
  func.func @transform_5(%arg0: i32) -> (i32, i32) {
    %c0_i32 = arith.constant 0 : i32
    %c0_i32_0 = arith.constant 0 : i32
    %c0_i32_1 = arith.constant 0 : i32
    return %c0_i32, %c0_i32_0 : i32, i32
  }
  func.func @transform_6(%arg0: i32) -> (i32, i32) {
    %c0_i32 = arith.constant 0 : i32
    %c0_i32_0 = arith.constant 0 : i32
    %c0_i32_1 = arith.constant 0 : i32
    return %c0_i32, %c0_i32_0 : i32, i32
  }
  func.func @transform_7(%arg0: i32) -> (i32, i32) {
    %c0_i32 = arith.constant 0 : i32
    %c0_i32_0 = arith.constant 0 : i32
    %c0_i32_1 = arith.constant 0 : i32
    return %c0_i32, %c0_i32_0 : i32, i32
  }
  func.func @transform_8(%arg0: i32) -> (i32, i32) {
    %c0_i32 = arith.constant 0 : i32
    %c0_i32_0 = arith.constant 0 : i32
    %c0_i32_1 = arith.constant 0 : i32
    return %c0_i32, %c0_i32_0 : i32, i32
  }
  func.func @transform_9(%arg0: i32) -> (i32, i32) {
    %c0_i32 = arith.constant 0 : i32
    %c0_i32_0 = arith.constant 0 : i32
    %c0_i32_1 = arith.constant 0 : i32
    return %c0_i32, %c0_i32_0 : i32, i32
  }
  func.func @transform_10(%arg0: i32) -> (i32, i32) {
    %c0_i32 = arith.constant 0 : i32
    %c0_i32_0 = arith.constant 0 : i32
    %c0_i32_1 = arith.constant 0 : i32
    return %c0_i32, %c0_i32_0 : i32, i32
  }
  func.func @transform_11(%arg0: i32) -> (i32, i32, i32) {
    %c0_i32 = arith.constant 0 : i32
    %c0_i32_0 = arith.constant 0 : i32
    %c0_i32_1 = arith.constant 0 : i32
    %c0_i32_2 = arith.constant 0 : i32
    return %c0_i32, %c0_i32_0, %c0_i32_1 : i32, i32, i32
  }
  func.func @transform_12(%arg0: i32) -> (i32, i32, i32) {
    %c0_i32 = arith.constant 0 : i32
    %c0_i32_0 = arith.constant 0 : i32
    %c0_i32_1 = arith.constant 0 : i32
    %c0_i32_2 = arith.constant 0 : i32
    return %c0_i32, %c0_i32_0, %c0_i32_1 : i32, i32, i32
  }
  func.func @transform_13(%arg0: i32) -> (i32, i32) {
    %c0_i32 = arith.constant 0 : i32
    %c0_i32_0 = arith.constant 0 : i32
    %c0_i32_1 = arith.constant 0 : i32
    return %c0_i32, %c0_i32_0 : i32, i32
  }
  func.func @transform_14(%arg0: i32) -> (i32, i32) {
    %c0_i32 = arith.constant 0 : i32
    %c0_i32_0 = arith.constant 0 : i32
    %c0_i32_1 = arith.constant 0 : i32
    return %c0_i32, %c0_i32_0 : i32, i32
  }
  func.func @transform_15(%arg0: i32) -> (i32, i32, i32) {
    %c0_i32 = arith.constant 0 : i32
    %c0_i32_0 = arith.constant 0 : i32
    %c0_i32_1 = arith.constant 0 : i32
    return %arg0, %c0_i32, %c0_i32_0 : i32, i32, i32
  }
  func.func @transform_16(%arg0: i32) -> (i32, i32, i32, i32) {
    %c0_i32 = arith.constant 0 : i32
    %c0_i32_0 = arith.constant 0 : i32
    %c0_i32_1 = arith.constant 0 : i32
    %c0_i32_2 = arith.constant 0 : i32
    return %arg0, %c0_i32, %c0_i32_0, %c0_i32_1 : i32, i32, i32, i32
  }
}

</mosaic_0001>

<bundles_post_ra>
// kernel: tpu_custom_call.1
= control target key start
LH: loop header
LB: loop body
LE: loop exit
PB: predicated region body
PF: predicated region fallthrough
CT: control target
= control target key end

     0   :  { %s4029_s0 = inlined_call_operand.hbm [shape: f32[2,8,32], index: 0, kind: input, shape index: {}]   ;;  %s4030_s1 = inlined_call_operand.vmem [shape: f32[32,32], index: 1, kind: input, shape index: {}]   ;;  %s4031_s2 = inlined_call_operand.vmem [shape: f32[32,32], index: 2, kind: input, shape index: {}]   ;;  %s4032_s3 = inlined_call_operand.vmem [shape: f32[32,16], index: 3, kind: input, shape index: {}]   ;;  %s4033_s4 = inlined_call_operand.vmem [shape: f32[32,16], index: 4, kind: input, shape index: {}]   ;;  %s4034_s5 = inlined_call_operand.hbm [shape: f32[1,32], index: 5, kind: input, shape index: {}]   ;;  %s4035_s6 = inlined_call_operand.hbm [shape: f32[1,32], index: 6, kind: input, shape index: {}]   ;;  %s4036_s7 = inlined_call_operand.hbm [shape: f32[1,16], index: 7, kind: input, shape index: {}]   ;;  %s4037_s8 = inlined_call_operand.hbm [shape: f32[1,16], index: 8, kind: input, shape index: {}]   ;;  %s4038_s9 = inlined_call_operand.vmem [shape: f32[32,32], index: 9, kind: input, shape index: {}]   ;;  %s4039_s10 = inlined_call_operand.hbm [shape: f32[1,32], index: 10, kind: input, shape index: {}]   ;;  %s4040_s11 = inlined_call_operand.hbm [shape: f32[8,16,16], index: 11, kind: input, shape index: {}]   ;;  %s4041_s12 = inlined_call_operand.vmem [shape: f32[8,1,16], index: 12, kind: input, shape index: {}]   ;;  %s4042_s13 = inlined_call_operand.vmem [shape: f32[8,16], index: 13, kind: input, shape index: {}]   ;;  %s4043_s14 = inlined_call_operand.vmem [shape: f32[8,1], index: 14, kind: input, shape index: {}]   ;;  %s4044_s15 = inlined_call_operand.hbm [shape: f32[2,8,8], index: 15, kind: output, shape index: {0}]   ;;  %s4045_s16 = inlined_call_operand.hbm [shape: f32[2,8,8,8], index: 16, kind: output, shape index: {1}]  }
   0x1   :  { %4056 = sst [smem:[#allocation26_spill]] %s4029_s0 }
   0x2   :  { %4057 = sst [smem:[#allocation27_spill]] %s4034_s5 }
   0x3   :  { %4058 = sst [smem:[#allocation28_spill]] %s4035_s6 }
   0x4   :  { %4059 = sst [smem:[#allocation29_spill]] %s4036_s7 }
   0x5   :  { %4060 = sst [smem:[#allocation30_spill]] %s4037_s8 }
   0x6   :  { %4061 = sst [smem:[#allocation31_spill]] %s4039_s10 }
   0x7   :  { %4062 = sst [smem:[#allocation32_spill]] %s4040_s11 }
   0x8   :  { %4063 = sst [smem:[#allocation33_spill]] %s4044_s15 }
   0x9   :  { %4064 = sst [smem:[#allocation34_spill]] %s4045_s16 }
   0xa   :  { %22 = vsyncpa [#allocation3], 0 }
   0xb   :  { %24 = vsyncpa [#allocation3 + $0x1], 0 }
   0xc   :  { %25 = vsyncpa [#allocation6], 0 }
   0xd   :  { %26 = vsyncpa [#allocation9], 0 }
   0xe   :  { %27 = vsyncpa [#allocation12], 0 }
   0xf   :  { %28 = vsyncpa [#allocation4], 0 }
  0x10   :  { %30 = vsyncpa [#allocation4 + $0x1], 0 }
  0x11   :  { %31 = vsyncpa [#allocation16], 0 }
  0x12   :  { %33 = vsyncpa [#allocation16 + $0x1], 0  ;;  %s3507_s21 = smov 0   ;;  %s3509_s22 = smov 0  }
  0x13   :  { %s3511_s23 = smov 0   ;;  %s3513_s24 = smov 0  }
  0x14 LB: > { %4065 = sst [smem:[#allocation23_spill]] %s3400_s23  ;;  %s3406_s25 = smov [#allocation5]   ;;  %s3404_s24 = sphi %s3513_s24, %s4097_s24   ;;  %s3400_s23 = sphi %s3511_s23, %s4099_s23   ;;  %s3396_s22 = sphi %s3509_s22, %s4101_s22   ;;  %s3392_s21 = sphi %s3507_s21, %s4100_s21  }
  0x15   : > { %s441_s26 = sshll.u32 %s3406_s25, 4  ;;  %s3528_s27 = sadd.s32 4294967295, %s3404_s24   ;;  %s442_s26 = int_to_ptr.vmem [resolvable:$true] %s441_s26 }
  0x16   : > { %p2690_p0 = scmp.ge.s32.totalorder %s3404_s24, 1  ;;  %p4049_p1 = scmp.eq.s32.totalorder %s3528_s27, 0 }
  0x17   : > { %p416_p2 = scmp.lt.s32.totalorder %s3404_s24, 3  ;;  %s3407_s29 = smov [#allocation8]  }
  0x18   : > { %s463_s30 = sshll.u32 %s3407_s29, 4  ;;  %s3408_s0 = smov [#allocation11]   ;;  %s3540_s30 = int_to_ptr.vmem [resolvable:$true] %s463_s30 }
  0x19   : > { %p3533_p3 = pnand %p2690_p0, %p416_p2  ;;  %s488_s17 = sshll.u32 %s3408_s0, 4  ;;  %s3548_s17 = int_to_ptr.vmem [resolvable:$true] %s488_s17 }
  0x1a   : > { %s3409_s19 = smov [#allocation7]   ;;  %s3125_s29 = scalar_lea.vmem %s442_s26, 16 }
  0x1b   : > { %s4066_s28 = scalar_select %p3533_p3, 1, 0 }
  0x1c   : > { %p3024_p5 = pneg %p3533_p3  ;;  %s3550_s20 = sshll.u32 %s3409_s19, 4  ;;  %s453_s20 = int_to_ptr.vmem [resolvable:$true] %s3550_s20 }
  0x1d   : > { %p3126_p8 = scmp.ne.s32.totalorder %s442_s26, %s3125_s29  ;;  %s3132_s0 = scalar_lea.vmem %s442_s26, 32 }
  0x1e   : > { %p3544_p6 = pnand %p3024_p5, %p4049_p1  ;;  %p3133_p11 = scmp.lt.s32.totalorder %s442_s26, %s442_s26 }
  0x1f   : > { %p3134_p12 = scmp.lt.s32.totalorder %s3132_s0, %s3125_s29 }
  0x20   : > { %p3554_p7 = pneg %p3544_p6 }
  0x21   : > { %p3135_p13 = por %p3134_p12, %p3133_p11 }
  0x22   : > { %p3128_p9 = pnand %p3126_p8, %p3554_p7 }
  0x24   : > { %p3129_p10 = pneg %p3128_p9 }
  0x26   : > { %p3136_p0 = pnand %p3135_p13, %p3129_p10 }
  0x28   : > { %3139 = shalt.err (!%p3136_p0)
}
  0x29   : > { %s4069_s5 = sld [smem:[#allocation27_spill]]  ;;  %s3151_s15 = scalar_lea.vmem %s3540_s30, 16 }
  0x2a   : > { %p3152_p2 = scmp.ne.s32.totalorder %s3540_s30, %s3151_s15  ;;  %s3158_s29 = scalar_lea.vmem %s3540_s30, 32 }
  0x2b   : > { %p3159_p9 = scmp.lt.s32.totalorder %s3540_s30, %s3540_s30  ;;  %p3160_p10 = scmp.lt.s32.totalorder %s3158_s29, %s3151_s15 }
  0x2c   : > { %p3154_p5 = pnand %p3152_p2, %p3554_p7 }
  0x2d   : > { %p3161_p11 = por %p3160_p10, %p3159_p9 }
  0x2e   : > { %p3155_p8 = pneg %p3154_p5 }
  0x2f   : > { %3027 = dma.hbm_to_vmem [thread:$0]  (!%p3544_p6), %s4069_s5, 16, %s442_s26, [#allocation6]  }
  0x30   : > { %p3162_p12 = pnand %p3161_p11, %p3155_p8 }
  0x32   : > { %3165 = shalt.err (!%p3162_p12)
}
  0x33   : > { %s4070_s7 = sld [smem:[#allocation29_spill]]  ;;  %s3177_s26 = scalar_lea.vmem %s3548_s17, 16 }
  0x34   : > { %p3178_p13 = scmp.ne.s32.totalorder %s3548_s17, %s3177_s26  ;;  %s3184_s15 = scalar_lea.vmem %s3548_s17, 32 }
  0x35   : > { %p3185_p5 = scmp.lt.s32.totalorder %s3548_s17, %s3548_s17  ;;  %p3186_p8 = scmp.lt.s32.totalorder %s3184_s15, %s3177_s26 }
  0x36   : > { %p3180_p0 = pnand %p3178_p13, %p3554_p7 }
  0x37   : > { %p3187_p9 = por %p3186_p8, %p3185_p5 }
  0x38   : > { %p3181_p2 = pneg %p3180_p0 }
  0x39   : > { %3033 = dma.hbm_to_vmem [thread:$0]  (!%p3544_p6), %s4070_s7, 16, %s3540_s30, [#allocation9]  }
  0x3a   : > { %p3188_p10 = pnand %p3187_p9, %p3181_p2 }
  0x3c   : > { %3191 = shalt.err (!%p3188_p10)
}
  0x3d   : > { %s4071_s10 = sld [smem:[#allocation31_spill]]  ;;  %s3410_s30 = smov [#allocation10]  }
  0x3e   : > { %s474_s16 = sshll.u32 %s3410_s30, 4  ;;  %s3203_s0 = scalar_lea.vmem %s453_s20, 16  ;;  %s475_s16 = int_to_ptr.vmem [resolvable:$true] %s474_s16 }
  0x3f   : > { %p3204_p11 = scmp.ne.s32.totalorder %s453_s20, %s3203_s0  ;;  %s3210_s26 = scalar_lea.vmem %s453_s20, 32 }
  0x40   : > { %p3211_p0 = scmp.lt.s32.totalorder %s453_s20, %s453_s20  ;;  %p3212_p2 = scmp.lt.s32.totalorder %s3210_s26, %s3203_s0 }
  0x41   : > { %p3206_p12 = pnand %p3204_p11, %p3554_p7 }
  0x42   : > { %p3213_p5 = por %p3212_p2, %p3211_p0 }
  0x43   : > { %3039 = dma.hbm_to_vmem [thread:$0]  (!%p3544_p6), %s4071_s10, 16, %s3548_s17, [#allocation12]  }
  0x44   : > { %p3207_p13 = pneg %p3206_p12 }
  0x46   : > { %p3214_p8 = pnand %p3213_p5, %p3207_p13 }
  0x48   : > { %3217 = shalt.err (!%p3214_p8)
}
  0x49   : > { %s4072_s6 = sld [smem:[#allocation28_spill]]  ;;  %s3229_s17 = scalar_lea.vmem %s475_s16, 16 }
  0x4a   : > { %p3230_p9 = scmp.ne.s32.totalorder %s475_s16, %s3229_s17  ;;  %s3236_s29 = scalar_lea.vmem %s475_s16, 32 }
  0x4b   : > { %p3237_p12 = scmp.lt.s32.totalorder %s475_s16, %s475_s16  ;;  %p3238_p4 = scmp.lt.s32.totalorder %s3236_s29, %s3229_s17 }
  0x4c   : > { %p3232_p10 = pnand %p3230_p9, %p3554_p7 }
  0x4d   : > { %p3239_p1 = por %p3238_p4, %p3237_p12 }
  0x4e   : > { %p3233_p11 = pneg %p3232_p10 }
  0x4f   : > { %3030 = dma.hbm_to_vmem [thread:$0]  (!%p3544_p6), %s4072_s6, 16, %s453_s20, [#allocation6]  }
  0x50   : > { %p3240_p0 = pnand %p3239_p1, %p3233_p11 }
  0x52   : > { %3243 = shalt.err (!%p3240_p0)
}
  0x53   : > { %s4073_s8 = sld [smem:[#allocation30_spill]]  ;;  %s3411_s20 = smov [#allocation13]  }
  0x54   : > { %s498_s26 = sshll.u32 %s3411_s20, 4  ;;  %s499_s26 = int_to_ptr.vmem [resolvable:$true] %s498_s26 }
  0x55   : > { %s3255_s15 = scalar_lea.vmem %s499_s26, 2048  ;;  %p3263_p8 = scmp.lt.s32.totalorder %s499_s26, %s499_s26 }
  0x56   : > { %p3256_p13 = scmp.ne.s32.totalorder %s499_s26, %s3255_s15  ;;  %p3264_p9 = scmp.lt.s32.totalorder %s3255_s15, %s3255_s15 }
  0x58   : > { %p3258_p2 = pnand %p3256_p13, %p3554_p7  ;;  %p3265_p4 = por %p3264_p9, %p3263_p8 }
  0x59   : > { %3036 = dma.hbm_to_vmem [thread:$0]  (!%p3544_p6), %s4073_s8, 16, %s475_s16, [#allocation9]  }
  0x5a   : > { %p3259_p5 = pneg %p3258_p2 }
  0x5c   : > { %p3266_p1 = pnand %p3265_p4, %p3259_p5 }
  0x5e   : > { %3269 = shalt.err (!%p3266_p1)
}
  0x5f   : > { %s3412_s19 = smov 128   ;;  %s3413_s25 = smov 8  }
  0x60   : > { %s4074_s11 = sld [smem:[#allocation32_spill]]  ;;  %s2689_s29 = sadd.s32 4294967294, %s3404_s24  }
  0x61   : > { %s3615_s30 = sadd.s32 1, %s3404_s24   ;;  %s46_s20 = sadd.s32 1, %s3400_s23 }
  0x62   : > { %4075 = sst [smem:[#allocation24_spill]] %s3615_s30  ;;  %s43_s0 = ssub.s32 %s3404_s24, %s3615_s30 }
  0x63   : > { %p44_p7 = scmp.eq.s32.totalorder %s43_s0, 0  ;;  %p53_p10 = scmp.ne.s32.totalorder %s3400_s23, %s3396_s22 }
  0x64   : > { %p54_p11 = scmp.eq.s32.totalorder %s3404_s24, 0  ;;  %p59_p12 = scmp.ne.s32.totalorder %s3396_s22, %s3392_s21 }
  0x65   : > { %s3626_s15 = scalar_select %p44_p7, %s3400_s23, %s46_s20  }
  0x66   : > { %3042 = dma.hbm_to_vmem [thread:$0]  (!%p3544_p6), %s4074_s11, 2048, %s499_s26, [#allocation12], %s3412_s19, %s3412_s19, %s3413_s25  }
  0x67   : > { %4076 = sst [smem:[#allocation25_spill]] %s3626_s15  ;;  %p3628_p0 = por %p54_p11, %p53_p10 }
  0x68   : > { %p4078_p13 = scmp.eq.s32.totalorder %s3528_s27, 0  ;;  %p377_p2 = scmp.eq.s32.totalorder %s3528_s27, 1 }
  0x69   : > { %p383_p5 = scmp.eq.s32.totalorder %s2689_s29, 1  ;;  %p3060_p8 = scmp.lt.s32.totalorder %s3404_s24, 2 }
  0x6a   : > { %p3634_p6 = por %p4078_p13, %p59_p12  ;;  %s521_s19 = sand.u32 1, %s3400_s23  }
  0x6b   : > { %p3641_p9 = por %p377_p2, %p53_p10  ;;  %p3645_p4 = por %p383_p5, %p59_p12 }
  0x6c   : > { %s4079_s26 = scalar_select %p3634_p6, 1, 0 }
  0x6d   : > { %s4080_s25 = scalar_select %p3641_p9, 1, 0 }
  0x6e   : > { %s4081_s16 = scalar_select %p3645_p4, 1, 0 }
  0x6f   : > { %s2698_s17 = sshll.u32 %s521_s19, 3  ;;  %s2699_s0 = sshll.u32 %s3404_s24, 7 }
  0x70   : > { %s4082_s6 = sld [smem:[#allocation26_spill]]  ;;  %s525_s29 = scalar_lea.vmem [#allocation2], %s2698_s17 }
  0x71   : > { %s532_s8 = sshll.u32 %s525_s29, 4  ;;  %p3657_p1 = pnand %p3060_p8, %p3628_p0  ;;  %s533_s8 = int_to_ptr.vmem [resolvable:$true] %s532_s8 }
  0x72   : > { %s522_s11 = scalar_lea.sflag [#allocation3], %s521_s19 }
  0x73   : > { %p3272_p10 = pneg %p3657_p1 }
  0x76   : > { %s3653_s7 = scalar_lea.hbm %s4082_s6, %s2699_s0  ;;  %s3275_s20 = scalar_lea.hbm %s4082_s6, 256 }
  0x77   : > { %s3270_s15 = scalar_lea.hbm %s3653_s7, 128  ;;  %p3276_p13 = scmp.lt.s32.totalorder %s3653_s7, %s4082_s6 }
  0x78   : > { %p3271_p7 = scmp.ne.s32.totalorder %s3653_s7, %s3270_s15  ;;  %p3277_p0 = scmp.lt.s32.totalorder %s3275_s20, %s3270_s15 }
  0x7a   : > { %p3273_p11 = pnand %p3272_p10, %p3271_p7  ;;  %p3278_p2 = por %p3277_p0, %p3276_p13 }
  0x7c   : > { %p3274_p12 = pneg %p3273_p11 }
  0x7e   : > { %p3279_p5 = pnand %p3278_p2, %p3274_p12 }
  0x80   : > { %3282 = shalt.err (!%p3279_p5)
}
  0x81   : > { %s3283_s18 = scalar_lea.vmem %s533_s8, 128  ;;  %s3414_s19 = smov [#allocation2]  }
  0x82   : > { %p3284_p8 = scmp.ne.s32.totalorder %s533_s8, %s3283_s18  ;;  %s3288_s23 = sshll.u32 %s3414_s19, 4  ;;  %s3289_s23 = int_to_ptr.vmem [resolvable:$false] %s3288_s23 }
  0x83   : > { %s3290_s30 = scalar_lea.vmem %s3289_s23, 256  ;;  %p3291_p7 = scmp.lt.s32.totalorder %s533_s8, %s3289_s23 }
  0x84   : > { %p3286_p4 = pnand %p3284_p8, %p3272_p10  ;;  %p3292_p11 = scmp.lt.s32.totalorder %s3290_s30, %s3283_s18 }
  0x86   : > { %p3287_p9 = pneg %p3286_p4  ;;  %p3293_p6 = por %p3292_p11, %p3291_p7 }
  0x88   : > { %p3294_p3 = pnand %p3293_p6, %p3287_p9 }
  0x8a   : > { %3297 = shalt.err (!%p3294_p3)
}
  0x8b   : > { %3046 = dma.hbm_to_vmem [thread:$0]  (!%p3657_p1), %s3653_s7, 128, %s533_s8, %s522_s11  }
  0x8c   : > { %p4084_p12 = scmp.ne.s32.totalorder %s4066_s28, 0 }
  0x8d   : > { %s3678_s15 = sand.u32 (!%p4084_p12), 1, %s3396_s22   ;;  %p4085_p6 = scmp.ne.s32.totalorder (!%p4084_p12), %s4079_s26, 0 }
  0x8e   : > { %541 = sbr.rel (%p4084_p12) target bundleno = 981 (0x3d5), region = 80  ;;  %s2701_s5 = sshll.u32 (!%p4084_p12), %s3678_s15, 3 }
  0x8f   : > { %s544_s23 = scalar_lea.sflag (!%p4084_p12), [#allocation3], %s3678_s15  ;;  %s547_s30 = scalar_lea.vmem (!%p4084_p12), [#allocation2], %s2701_s5 }
  0x93   : > { %3367 = dma.done.wait (%p4085_p6), %s544_s23, 128  }
  0x94   : > { %3369 = vsyncadd (%p4085_p6), %s544_s23, 4294967168  ;;  %p4086_p3 = scmp.eq.s32.totalorder %s3528_s27, 0 }
  0x96   : > { %3371 = dma.done.wait (%p4086_p3), [#allocation6], 32   ;;  %p4087_p9 = pmov %p4086_p3 }
  0x97   : > { %p4088_p4 = pmov %p4086_p3 }
  0x98   : > { %3373 = vsyncadd (%p4087_p9), [#allocation6], 4294967264 }
  0x99   : > { %3375 = dma.done.wait (%p4088_p4), [#allocation9], 32   ;;  %p4089_p1 = pmov %p4086_p3 }
  0x9b   : > { %3377 = vsyncadd (%p4089_p1), [#allocation9], 4294967264  ;;  %p4090_p10 = pmov %p4089_p1 }
  0x9c   : > { %p4091_p13 = pmov %p4089_p1 }
  0x9d   : > { %3379 = dma.done.wait (%p4090_p10), [#allocation12], 2064  }
  0x9e   : > { %3381 = vsyncadd (%p4091_p13), [#allocation12], 4294965232  ;;  %v3415_v0 = vmov 0.0   ;;  %vm3416_vm0 = vmmov 0   ;;  %v629_v1 = vld [vmem:[%s4030_s1 + $0x18] sm:$0xff]  ;;  %v628_v2 = vld [vmem:[%s4030_s1 + $0x10] sm:$0xff] }
  0x9f   : > { %2833 = vmatprep.subr.mxu0 %v3415_v0  ;;  %2841 = vmatprep.mubr.msk.f32.mxu0 %vm3416_vm0, %v3415_v0  ;;  %v627_v3 = vld [vmem:[%s4030_s1 + $0x8] sm:$0xff]  ;;  %v717_v4 = vld [vmem:[%s4031_s2 + $0x18] sm:$0xff]  ;;  %v716_v5 = vld [vmem:[%s4031_s2 + $0x10] sm:$0xff]  ;;  %vm637_vm1 = vcmask 261120   ;;  %vm1200_vm5 = vcmask 130048   ;;  %v3417_v51 = vmov 0  }
  0xa0   : > { %2844 = vmatprep.subr.mxu1 %v3415_v0  ;;  %2852 = vmatprep.mubr.msk.f32.mxu1 %vm3416_vm0, %v3415_v0  ;;  %v626_v6 = vld [vmem:[%s4030_s1] sm:$0xff]  ;;  %v801_v8 = vld [vmem:[%s4032_s3 + $0x18] sm:$0xff]  ;;  %v715_v9 = vld [vmem:[%s4031_s2 + $0x8] sm:$0xff]  ;;  %vm1126_vm7 = vcmask 64512   ;;  %s3908_s18 = scalar_lea.vmem [#allocation14], %s2701_s5  ;;  %s2758_s28 = sshll.u32 %s3528_s27, 7 }
  0xa1   : > { %2834 = vmatpush3.msra.mxu0 %v629_v1  ;;  %2845 = vmatpush3.msra.mxu1 %v717_v4  ;;  %v625_v7 = vld [vmem:[%s547_s30] sm:$0xff]  ;;  %v800_v10 = vld [vmem:[%s4032_s3 + $0x10] sm:$0xff]  ;;  %v969_v14 = vld [vmem:[%s4038_s9 + $0x18] sm:$0xff]  ;;  %s4092_s20 = sld [smem:[#allocation33_spill]]  ;;  %s2514_s29 = sshll.u32 %s3908_s18, 4  ;;  %s2515_s29 = int_to_ptr.vmem [resolvable:$true] %s2514_s29 }
  0xa2   : > { %2835 = vmatprep.subr.mxu0 %v3415_v0  ;;  %2846 = vmatprep.subr.mxu1 %v3415_v0  ;;  %v714_v11 = vld [vmem:[%s4031_s2] sm:$0xff]  ;;  %v799_v12 = vld [vmem:[%s4032_s3 + $0x8] sm:$0xff]  ;;  %v968_v15 = vld [vmem:[%s4038_s9 + $0x10] sm:$0xff]  ;;  %s2496_s19 = scalar_lea.sflag [#allocation4], %s3678_s15  ;;  %s3298_s23 = scalar_lea.vmem %s2515_s29, 128 }
  0xa3   : > { %2836 = vmatpush3.msra.mxu0 %v628_v2  ;;  %2847 = vmatpush3.msra.mxu1 %v716_v5  ;;  %v798_v13 = vld [vmem:[%s4032_s3] sm:$0xff]  ;;  %v967_v16 = vld [vmem:[%s4038_s9 + $0x8] sm:$0xff]  ;;  %v885_v18 = vld [vmem:[%s4033_s4 + $0x18] sm:$0xff]  ;;  %p3299_p0 = scmp.ne.s32.totalorder %s2515_s29, %s3298_s23  ;;  %p4093_p2 = scmp.ne.s32.totalorder %s4080_s25, 0 }
  0xa4   : > { %2837 = vmatprep.subr.mxu0 %v3415_v0  ;;  %2848 = vmatprep.subr.mxu1 %v3415_v0  ;;  %v966_v17 = vld [vmem:[%s4038_s9] sm:$0xff]  ;;  %v884_v19 = vld [vmem:[%s4033_s4 + $0x10] sm:$0xff]  ;;  %v883_v20 = vld [vmem:[%s4033_s4 + $0x8] sm:$0xff]  ;;  %s3418_s7 = smov [#allocation14]  }
  0xa5   : > { %2838 = vmatpush3.msra.mxu0 %v627_v3  ;;  %2849 = vmatpush3.msra.mxu1 %v715_v9  ;;  %v882_v21 = vld [vmem:[%s4033_s4] sm:$0xff]  ;;  %v2710_v22 = vld [vmem:[#allocation5] ss:$0 sm:$0xff]  ;;  %v2712_v27 = vld [vmem:[#allocation7] ss:$0 sm:$0xff]  ;;  %p3300_p5 = pnand %p3299_p0, %p4093_p2  ;;  %s3302_s8 = sshll.u32 %s3418_s7, 4  ;;  %s3303_s8 = int_to_ptr.vmem [resolvable:$false] %s3302_s8 }
  0xa6   : > { %2839 = vmatprep.subr.mxu0 %v3415_v0  ;;  %2850 = vmatprep.subr.mxu1 %v3415_v0  ;;  %v1131_v28 = vld [vmem:[#allocation13 + $0x18] sm:$0xff]  ;;  %v1130_v32 = vld [vmem:[#allocation13 + $0x10] sm:$0xff]  ;;  %v1765_v48 = vld [vmem:[%s4043_s14] sm:$0xff]  ;;  %s3304_s5 = scalar_lea.vmem %s3303_s8, 256  ;;  %p3305_p7 = scmp.lt.s32.totalorder %s2515_s29, %s3303_s8 }
  0xa7   : > { %2840 = vmatpush3.msra.mxu0 %v626_v6  ;;  %2851 = vmatpush3.msra.mxu1 %v714_v11  ;;  %v2714_v31 = vld [vmem:[#allocation8] ss:$0 sm:$0xff]  ;;  %v1134_v43 = vld [vmem:[#allocation13 + $0x30] sm:$0xff]  ;;  %v2716_v49 = vld [vmem:[#allocation10] ss:$0 sm:$0xff]  ;;  %s2512_s17 = scalar_lea.hbm %s4092_s20, %s2758_s28  ;;  %p3301_p8 = pneg %p3300_p5 }
  0xa8   : > { %2842 = vmatmul.mubr.msk.f32.vlgmr.msra.gmra.mxu0 %vm637_vm1, %v625_v7  ;;  %2855 = vmatprep.subr.mxu0 %v3415_v0  ;;  %v1135_v41 = vld [vmem:[#allocation13 + $0x38] sm:$0xff]  ;;  %v1138_v45 = vld [vmem:[#allocation13 + $0x50] sm:$0xff]  ;;  %v1129_v59 = vld [vmem:[#allocation13 + $0x8] sm:$0xff]  ;;  %p3306_p11 = scmp.lt.s32.totalorder %s3304_s5, %s3298_s23 }
  0xa9   : > { %2856 = vmatpush3.msra.mxu0 %v801_v8  ;;  %2863 = vmatprep.mubr.msk.f32.mxu0 %vm3416_vm0, %v3415_v0  ;;  %v1139_v44 = vld [vmem:[#allocation13 + $0x58] sm:$0xff]  ;;  %v1142_v47 = vld [vmem:[#allocation13 + $0x70] sm:$0xff]  ;;  %v1128_v61 = vld [vmem:[#allocation13] sm:$0xff] }
  0xaa   : > { %2857 = vmatprep.subr.mxu0 %v3415_v0  ;;  %2853 = vmatmul.mubr.msk.f32.vlgmr.msra.gmra.mxu1 %vm637_vm1, %v625_v7  ;;  %v1143_v46 = vld [vmem:[#allocation13 + $0x78] sm:$0xff]  ;;  %v1133_v62 = vld [vmem:[#allocation13 + $0x28] sm:$0xff]  ;;  %v1132_v63 = vld [vmem:[#allocation13 + $0x20] sm:$0xff]  ;;  %p3307_p12 = por %p3306_p11, %p3305_p7 }
  0xab   : > { %2858 = vmatpush3.msra.mxu0 %v800_v10  ;;  %2866 = vmatprep.subr.mxu1 %v3415_v0  ;;  %v2718_v56 = vld [vmem:[#allocation11] ss:$0 sm:$0xff]  ;;  %v1137_v2 = vld [vmem:[#allocation13 + $0x48] sm:$0xff]  ;;  %v1136_v4 = vld [vmem:[#allocation13 + $0x40] sm:$0xff] }
  0xac   : > { %2859 = vmatprep.subr.mxu0 %v3415_v0  ;;  %2874 = vmatprep.mubr.msk.f32.mxu1 %vm3416_vm0, %v3415_v0  ;;  %v1141_v6 = vld [vmem:[#allocation13 + $0x68] sm:$0xff]  ;;  %v1140_v8 = vld [vmem:[#allocation13 + $0x60] sm:$0xff]  ;;  %p3308_p6 = pnand %p3307_p12, %p3301_p8 }
  0xad   : > { %2860 = vmatpush3.msra.mxu0 %v799_v12  ;;  %2867 = vmatpush3.msra.mxu1 %v885_v18  ;;  %v1764_v11 = vld [vmem:[%s4042_s13] sm:$0xff] }
  0xae   : > { %2861 = vmatprep.subr.mxu0 %v3415_v0  ;;  %2868 = vmatprep.subr.mxu1 %v3415_v0  ;;  %v2723_v12 = vld [vmem:[%s4041_s12 + $0x1] ss:$0 sm:$0xff]  ;;  %v2727_v18 = vld [vmem:[%s4041_s12 + $0x5] ss:$0 sm:$0xff] }
  0xaf   : > { %2862 = vmatpush3.msra.mxu0 %v798_v13  ;;  %2869 = vmatpush3.msra.mxu1 %v884_v19 }
  0xb0   : > { %2864 = vmatmul.mubr.msk.f32.vlgmr.msra.gmra.mxu0 %vm637_vm1, %v625_v7  ;;  %2877 = vmatprep.subr.mxu0 %v3415_v0 }
  0xb1   : > { %2878 = vmatpush3.msra.mxu0 %v969_v14  ;;  %2885 = vmatprep.mubr.msk.f32.mxu0 %vm3416_vm0, %v3415_v0 }
  0xb2   : > { %2879 = vmatprep.subr.mxu0 %v3415_v0  ;;  %2870 = vmatprep.subr.mxu1 %v3415_v0 }
  0xb3   : > { %2880 = vmatpush3.msra.mxu0 %v968_v15  ;;  %2871 = vmatpush3.msra.mxu1 %v883_v20  ;;  %v2729_v20 = vld [vmem:[%s4041_s12 + $0x7] ss:$0 sm:$0xff] }
  0xb4   : > { %2881 = vmatprep.subr.mxu0 %v3415_v0  ;;  %2872 = vmatprep.subr.mxu1 %v3415_v0 }
  0xb5   : > { %2882 = vmatpush3.msra.mxu0 %v967_v16  ;;  %2873 = vmatpush3.msra.mxu1 %v882_v21  ;;  %v2725_v16 = vld [vmem:[%s4041_s12 + $0x3] ss:$0 sm:$0xff] }
  0xb6   : > { %2883 = vmatprep.subr.mxu0 %v3415_v0  ;;  %2875 = vmatmul.mubr.msk.f32.vlgmr.msra.gmra.mxu1 %vm637_vm1, %v625_v7 }
  0xb7   : > { %2884 = vmatpush3.msra.mxu0 %v966_v17  ;;  %2888 = vmatprep.subr.mxu1 %v3415_v0 }
  0xb8   : > { %2900 = vmatprep.subr.mxu0 %v3415_v0  ;;  %2890 = vmatprep.mubr.msk.f32.mxu1 %vm3416_vm0, %v3415_v0 }
  0xb9   : > { %3113 = vset.pattern.permute.xlu0 %v3417_v51 }
  0xba   : > { %1768 = vperm.xlu0 %3113, %v1765_v48  }
 0x168   : > { %v707_v23 = vpop.f32.mrf.mxu0 }
 0x169   : > { %v708_v24 = vadd.f32 %v2710_v22, %v707_v23 }
 0x16a   : > { %v2843_v25 = vpop.f32.mrf.mxu0  ;;  %v791_v30 = vpop.f32.mrf.mxu1 }
 0x16b   : > { %vm711_vm2 = vcmp.ge.f32.partialorder %v708_v24, 0.0  ;;  %v712_v26 = vmul.f32 0.1, %v708_v24  ;;  %v792_v33 = vadd.f32 %v2712_v27, %v791_v30 }
 0x16c   : > { %v2854_v34 = vpop.f32.mrf.mxu1 }
 0x16d   : > { %v713_v29 = vsel %vm711_vm2, %v708_v24, %v712_v26  ;;  %vm795_vm3 = vcmp.ge.f32.partialorder %v792_v33, 0.0  ;;  %v796_v36 = vmul.f32 0.1, %v792_v33  ;;  %v2722_v24 = vld [vmem:[%s4041_s12] ss:$0 sm:$0xff] }
 0x16e   : > { %2886 = vmatmul.mubr.msk.f32.vlgmr.msra.gmra.mxu0 %vm637_vm1, %v713_v29 }
 0x16f   : > { %2901 = vmatpush3.msra.mxu0 %v1131_v28  ;;  %2904 = vmatprep.mubr.msk.f32.mxu0 %vm3416_vm0, %v3415_v0  ;;  %v797_v38 = vsel %vm795_vm3, %v792_v33, %v796_v36  ;;  %v2724_v28 = vld [vmem:[%s4041_s12 + $0x2] ss:$0 sm:$0xff]  ;;  %v1844_v33 = vlaneseq }
 0x170   : > { %v875_v35 = vpop.f32.mrf.mxu0  ;;  %2902 = vmatprep.subr.mxu0 %v3415_v0  ;;  %2889 = vmatpush3.xpose.msk.msra.mxu1 %vm637_vm1, %v797_v38 }
 0x171   : > { %v876_v37 = vadd.f32 %v2714_v31, %v875_v35  ;;  %2903 = vmatpush3.msra.mxu0 %v1130_v32  ;;  %2893 = vmatprep.subr.mxu1 %v3415_v0  ;;  %v2726_v32 = vld [vmem:[%s4041_s12 + $0x4] ss:$0 sm:$0xff]  ;;  %v1845_v38 = vshrl.u32 %v1844_v33, 7 }
 0x172   : > { %2914 = vmatprep.subr.mxu0 %v3415_v0  ;;  %v2865_v39 = vpop.f32.mrf.mxu0 }
 0x173   : > { %vm879_vm4 = vcmp.ge.f32.partialorder %v876_v37, 0.0  ;;  %v880_v40 = vmul.f32 0.1, %v876_v37  ;;  %v1860_v48 = vsub.s32 2, %v1845_v38 }
 0x175   : > { %v3805_v42 = vsel %vm879_vm4, %v876_v37, %v880_v40  ;;  %v2728_v37 = vld [vmem:[%s4041_s12 + $0x6] ss:$0 sm:$0xff] }
 0x176   : > { %2905 = vmatmul.mubr.msk.f32.vlgmr.msra.gmra.mxu0 %vm1200_vm5, %v3805_v42  ;;  %v959_v50 = vpop.f32.mrf.mxu1 }
 0x177   : > { %2915 = vmatpush3.msra.mxu0 %v1135_v41  ;;  %2918 = vmatprep.mubr.msk.f32.mxu0 %vm3416_vm0, %v3415_v0  ;;  %v960_v52 = vadd.f32 %v2716_v49, %v959_v50 }
 0x178   : > { %2916 = vmatprep.subr.mxu0 %v3415_v0  ;;  %v2876_v53 = vpop.f32.mrf.mxu1 }
 0x179   : > { %2917 = vmatpush3.msra.mxu0 %v1134_v43  ;;  %vm963_vm6 = vcmp.ge.f32.partialorder %v960_v52, 0.0  ;;  %v964_v54 = vmul.f32 0.1, %v960_v52  ;;  %v1846_v43 = vsub.s32 0, %v1845_v38 }
 0x17a   : > { %2919 = vmatmul.mubr.msk.f32.vlgmr.msra.gmra.mxu0 %vm1200_vm5, %v3805_v42  ;;  %2928 = vmatprep.subr.mxu0 %v3415_v0 }
 0x17b   : > { %2929 = vmatpush3.msra.mxu0 %v1139_v44  ;;  %2932 = vmatprep.mubr.msk.f32.mxu0 %vm3416_vm0, %v3415_v0  ;;  %v3832_v55 = vsel %vm963_vm6, %v960_v52, %v964_v54  ;;  %v1853_v44 = vsub.s32 1, %v1845_v38  ;;  %v1881_v54 = vsub.s32 5, %v1845_v38 }
 0x17c   : > { %2930 = vmatprep.subr.mxu0 %v3415_v0 }
 0x17d   : > { %2931 = vmatpush3.msra.mxu0 %v1138_v45 }
 0x17e   : > { %2933 = vmatmul.mubr.msk.f32.vlgmr.msra.gmra.mxu0 %vm1200_vm5, %v3805_v42  ;;  %2942 = vmatprep.subr.mxu0 %v3415_v0 }
 0x17f   : > { %2943 = vmatpush3.msra.mxu0 %v1143_v46  ;;  %2946 = vmatprep.mubr.msk.f32.mxu0 %vm3416_vm0, %v3415_v0 }
 0x180   : > { %2944 = vmatprep.subr.mxu0 %v3415_v0 }
 0x181   : > { %2945 = vmatpush3.msra.mxu0 %v1142_v47  ;;  %v1867_v47 = vsub.s32 3, %v1845_v38 }
 0x182   : > { %2947 = vmatmul.mubr.msk.f32.vlgmr.msra.gmra.mxu0 %vm1200_vm5, %v3805_v42  ;;  %2954 = vmatprep.subr.mxu0 %v3415_v0 }
 0x183   : > { %2956 = vmatprep.mubr.msk.f32.mxu0 %vm3416_vm0, %v3415_v0  ;;  %2955 = vmatpush3.xpose.msk.msra.mxu0 %vm1200_vm5, %v3832_v55 }
 0x184   : > { %2964 = vmatprep.subr.mxu0 %v3415_v0 }
 0x22e   : > { %v1046_v57 = vpop.f32.mrf.mxu0 }
 0x22f   : > { %v1047_v58 = vadd.f32 %v2718_v56, %v1046_v57 }
 0x230   : > { %v2887_v60 = vpop.f32.mrf.mxu0 }
 0x231   : > { %2891 = vmatmul.mubr.msk.f32.vlgmr.msra.gmra.mxu1 %vm637_vm1, %v1047_v58 }
 0x232   : > { %2894 = vmatpush3.msra.mxu1 %v1129_v59  ;;  %2897 = vmatprep.mubr.msk.f32.mxu1 %vm3416_vm0, %v3415_v0  ;;  %v1895_v59 = vsub.s32 7, %v1845_v38 }
 0x233   : > { %2895 = vmatprep.subr.mxu1 %v3415_v0 }
 0x234   : > { %2896 = vmatpush3.msra.mxu1 %v1128_v61  ;;  %v1888_v61 = vsub.s32 6, %v1845_v38 }
 0x235   : > { %2907 = vmatprep.subr.mxu1 %v3415_v0  ;;  %2898 = vmatmul.mubr.msk.f32.vlgmr.msra.gmra.mxu1 %vm1200_vm5, %v3805_v42 }
 0x236   : > { %2908 = vmatpush3.msra.mxu1 %v1133_v62  ;;  %2911 = vmatprep.mubr.msk.f32.mxu1 %vm3416_vm0, %v3415_v0  ;;  %v1340_v1 = vpop.f32.mrf.mxu0 }
 0x237   : > { %2909 = vmatprep.subr.mxu1 %v3415_v0  ;;  %v1341_v15 = vadd.f32 %v2723_v12, %v1340_v1 }
 0x238   : > { %2910 = vmatpush3.msra.mxu1 %v1132_v63  ;;  %v2906_v3 = vpop.f32.mrf.mxu0 }
 0x239   : > { %2921 = vmatprep.subr.mxu1 %v3415_v0  ;;  %2912 = vmatmul.mubr.msk.f32.vlgmr.msra.gmra.mxu1 %vm1200_vm5, %v3805_v42 }
 0x23a   : > { %2922 = vmatpush3.msra.mxu1 %v1137_v2  ;;  %2925 = vmatprep.mubr.msk.f32.mxu1 %vm3416_vm0, %v3415_v0  ;;  %v1480_v5 = vpop.f32.mrf.mxu0 }
 0x23b   : > { %2923 = vmatprep.subr.mxu1 %v3415_v0  ;;  %v1481_v17 = vadd.f32 %v2725_v16, %v1480_v5 }
 0x23c   : > { %2924 = vmatpush3.msra.mxu1 %v1136_v4  ;;  %v2920_v7 = vpop.f32.mrf.mxu0 }
 0x23d   : > { %2935 = vmatprep.subr.mxu1 %v3415_v0  ;;  %2926 = vmatmul.mubr.msk.f32.vlgmr.msra.gmra.mxu1 %vm1200_vm5, %v3805_v42 }
 0x23e   : > { %2936 = vmatpush3.msra.mxu1 %v1141_v6  ;;  %2939 = vmatprep.mubr.msk.f32.mxu1 %vm3416_vm0, %v3415_v0  ;;  %v1620_v9 = vpop.f32.mrf.mxu0 }
 0x23f   : > { %2937 = vmatprep.subr.mxu1 %v3415_v0  ;;  %v1621_v19 = vadd.f32 %v2727_v18, %v1620_v9 }
 0x240   : > { %2938 = vmatpush3.msra.mxu1 %v1140_v8  ;;  %v2934_v10 = vpop.f32.mrf.mxu0 }
 0x241   : > { %2949 = vmatprep.subr.mxu1 %v3415_v0  ;;  %2940 = vmatmul.mubr.msk.f32.vlgmr.msra.gmra.mxu1 %vm1200_vm5, %v3805_v42 }
 0x242   : > { %2950 = vmatpush3.xpose.msk.msra.mxu1 %vm1200_vm5, %v3805_v42  ;;  %2951 = vmatprep.mubr.msk.f32.mxu1 %vm3416_vm0, %v3415_v0  ;;  %v1760_v13 = vpop.f32.mrf.mxu0  ;;  %v1769_v42 = vpop.permute.xlu0 %1768 }
 0x243   : > { %2959 = vmatprep.subr.mxu1 %v3415_v0  ;;  %v1761_v21 = vadd.f32 %v2729_v20, %v1760_v13 }
 0x244   : > { %v2948_v14 = vpop.f32.mrf.mxu0 }
 0x245   : > { %2952 = vmatmul.mubr.msk.f32.vlgmr.msra.gmra.mxu1 %vm1200_vm5, %v1764_v11 }
 0x246   : > { %2960 = vmatpush3.xpose.msk.msra.mxu1 %vm1200_vm5, %v3832_v55  ;;  %2961 = vmatprep.mubr.msk.f32.mxu1 %vm3416_vm0, %v3415_v0 }
 0x247   : > { %2969 = vmatprep.subr.mxu1 %v3415_v0 }
 0x249   : > { %2962 = vmatmul.mubr.msk.f32.vlgmr.msra.gmra.mxu1 %vm1200_vm5, %v1341_v15 }
 0x24a   : > { %2970 = vmatpush3.xpose.msk.msra.mxu1 %vm1200_vm5, %v3832_v55  ;;  %2971 = vmatprep.mubr.msk.f32.mxu1 %vm3416_vm0, %v3415_v0 }
 0x24b   : > { %2979 = vmatprep.subr.mxu1 %v3415_v0 }
 0x24d   : > { %2972 = vmatmul.mubr.msk.f32.vlgmr.msra.gmra.mxu1 %vm1200_vm5, %v1481_v17 }
 0x24e   : > { %2980 = vmatpush3.xpose.msk.msra.mxu1 %vm1200_vm5, %v3832_v55  ;;  %2981 = vmatprep.mubr.msk.f32.mxu1 %vm3416_vm0, %v3415_v0 }
 0x24f   : > { %2989 = vmatprep.subr.mxu1 %v3415_v0 }
 0x251   : > { %2982 = vmatmul.mubr.msk.f32.vlgmr.msra.gmra.mxu1 %vm1200_vm5, %v1621_v19 }
 0x252   : > { %2990 = vmatpush3.xpose.msk.msra.mxu1 %vm1200_vm5, %v3832_v55  ;;  %2991 = vmatprep.mubr.msk.f32.mxu1 %vm3416_vm0, %v3415_v0 }
 0x255   : > { %2992 = vmatmul.mubr.msk.f32.vlgmr.msra.gmra.mxu1 %vm1200_vm5, %v1761_v21 }
 0x2f1   : > { %v1122_v22 = vpop.f32.mrf.mxu1 }
 0x2f2   : > { %1127 = vst.msk [vmem:[%s3908_s18] sm:$0xff] %vm1126_vm7, %v1122_v22 }
 0x2f3   : > { %v2892_v23 = vpop.f32.mrf.mxu1 }
 0x2f5   : > { %v1270_v25 = vpop.f32.mrf.mxu1 }
 0x2f6   : > { %v1271_v26 = vadd.f32 %v2722_v24, %v1270_v25 }
 0x2f7   : > { %v2899_v27 = vpop.f32.mrf.mxu1 }
 0x2f8   : > { %2957 = vmatmul.mubr.msk.f32.vlgmr.msra.gmra.mxu0 %vm1200_vm5, %v1271_v26 }
 0x2f9   : > { %2965 = vmatpush3.xpose.msk.msra.mxu0 %vm1200_vm5, %v3832_v55  ;;  %v1410_v29 = vpop.f32.mrf.mxu1  ;;  %2966 = vmatprep.mubr.msk.f32.mxu0 %vm3416_vm0, %v3415_v0 }
 0x2fa   : > { %v1411_v30 = vadd.f32 %v2724_v28, %v1410_v29  ;;  %2974 = vmatprep.subr.mxu0 %v3415_v0 }
 0x2fb   : > { %v2913_v31 = vpop.f32.mrf.mxu1 }
 0x2fc   : > { %2967 = vmatmul.mubr.msk.f32.vlgmr.msra.gmra.mxu0 %vm1200_vm5, %v1411_v30 }
 0x2fd   : > { %2975 = vmatpush3.xpose.msk.msra.mxu0 %vm1200_vm5, %v3832_v55  ;;  %v1550_v34 = vpop.f32.mrf.mxu1  ;;  %2976 = vmatprep.mubr.msk.f32.mxu0 %vm3416_vm0, %v3415_v0 }
 0x2fe   : > { %v1551_v35 = vadd.f32 %v2726_v32, %v1550_v34  ;;  %2984 = vmatprep.subr.mxu0 %v3415_v0 }
 0x2ff   : > { %v2927_v36 = vpop.f32.mrf.mxu1 }
 0x300   : > { %2977 = vmatmul.mubr.msk.f32.vlgmr.msra.gmra.mxu0 %vm1200_vm5, %v1551_v35 }
 0x301   : > { %2985 = vmatpush3.xpose.msk.msra.mxu0 %vm1200_vm5, %v3832_v55  ;;  %v1690_v39 = vpop.f32.mrf.mxu1  ;;  %2986 = vmatprep.mubr.msk.f32.mxu0 %vm3416_vm0, %v3415_v0  ;;  %v1874_v55 = vsub.s32 4, %v1845_v38 }
 0x302   : > { %v1691_v40 = vadd.f32 %v2728_v37, %v1690_v39 }
 0x303   : > { %v2941_v41 = vpop.f32.mrf.mxu1 }
 0x304   : > { %2987 = vmatmul.mubr.msk.f32.vlgmr.msra.gmra.mxu0 %vm1200_vm5, %v1691_v40 }
 0x305   : > { %v1840_v45 = vpop.f32.mrf.mxu1 }
 0x306   : > { %v1841_v46 = vadd.f32 %v1840_v45, %v1769_v42 }
 0x307   : > { %v2953_v49 = vpop.f32.mrf.mxu1 }
 0x308   : > { %v1847_v50 = vrot.slane %v1841_v46, %v1846_v43  ;;  %v1854_v51 = vrot.slane %v1841_v46, %v1853_v44  ;;  %v1868_v53 = vrot.slane %v1841_v46, %v1867_v47  ;;  %v1861_v0 = vrot.slane %v1841_v46, %v1860_v48 }
 0x309   : > { %v2045_v52 = vpop.f32.mrf.mxu1  ;;  %v1882_v58 = vrot.slane %v1841_v46, %v1881_v54  ;;  %v1875_v60 = vrot.slane %v1841_v46, %v1874_v55  ;;  %v1896_v1 = vrot.slane %v1841_v46, %v1895_v59  ;;  %v1889_v2 = vrot.slane %v1841_v46, %v1888_v61 }
 0x30a   : > { %1849 = vbcast.lane.b32.xlu0 %v1847_v50, 256  ;;  %1856 = vbcast.lane.b32.xlu1 %v1854_v51, 256 }
 0x30b   : > { %v2963_v56 = vpop.f32.mrf.mxu1 }
 0x30d   : > { %v2191_v57 = vpop.f32.mrf.mxu1 }
 0x30e   : > { %1870 = vbcast.lane.b32.xlu0 %v1868_v53, 256  ;;  %1863 = vbcast.lane.b32.xlu1 %v1861_v0, 256 }
 0x30f   : > { %v2973_v62 = vpop.f32.mrf.mxu1 }
 0x311   : > { %v2337_v63 = vpop.f32.mrf.mxu1 }
 0x312   : > { %1884 = vbcast.lane.b32.xlu0 %v1882_v58, 256  ;;  %1877 = vbcast.lane.b32.xlu1 %v1875_v60, 256 }
 0x313   : > { %v2983_v3 = vpop.f32.mrf.mxu1 }
 0x315   : > { %v2483_v4 = vpop.f32.mrf.mxu1 }
 0x316   : > { %1898 = vbcast.lane.b32.xlu0 %v1896_v1, 256  ;;  %1891 = vbcast.lane.b32.xlu1 %v1889_v2, 256 }
 0x317   : > { %v2993_v5 = vpop.f32.mrf.mxu1 }
 0x318   : > { %3311 = shalt.err (!%p3308_p6)
}
 0x319   : > { %s3312_s10 = scalar_lea.hbm %s2512_s17, 128  ;;  %s3316_s11 = scalar_lea.hbm %s4092_s20, 256 }
 0x31a   : > { %p3313_p3 = scmp.ne.s32.totalorder %s2512_s17, %s3312_s10  ;;  %p3317_p1 = scmp.lt.s32.totalorder %s2512_s17, %s4092_s20 }
 0x31b   : > { %p3318_p10 = scmp.lt.s32.totalorder %s3316_s11, %s3312_s10 }
 0x31c   : > { %p3314_p9 = pnand %p3313_p3, %p4093_p2 }
 0x31d   : > { %p3319_p13 = por %p3318_p10, %p3317_p1 }
 0x31e   : > { %p3315_p4 = pneg %p3314_p9 }
 0x320   : > { %p3320_p0 = pnand %p3319_p13, %p3315_p4 }
 0x322   : > { %3323 = shalt.err (!%p3320_p0)
}
 0x323   : > { %3020 = dma.vmem_to_hbm [thread:$0]  (%p4093_p2), %s2515_s29, 128, %s2512_s17, %s2496_s19  }
 0x324   : > { %s2709_s0 = sshll.u32 %s3678_s15, 6  ;;  %s2763_s17 = sshll.u32 %s3528_s27, 10 }
 0x325   : > { %s3961_s23 = scalar_lea.vmem [#allocation15], %s2709_s0  ;;  %s4094_s8 = sld [smem:[#allocation34_spill]] }
 0x326   : > { %s2527_s29 = sshll.u32 %s3961_s23, 4  ;;  %s2501_s27 = scalar_lea.sflag [#allocation16], %s3678_s15  ;;  %s3984_s29 = int_to_ptr.vmem [resolvable:$true] %s2527_s29 }
 0x327   : > { %s3324_s10 = scalar_lea.vmem %s3984_s29, 1024  ;;  %s3419_s18 = smov [#allocation15]  }
 0x328   : > { %p3325_p5 = scmp.ne.s32.totalorder %s3984_s29, %s3324_s10  ;;  %s3328_s30 = sshll.u32 %s3419_s18, 4  ;;  %s3329_s30 = int_to_ptr.vmem [resolvable:$false] %s3328_s30 }
 0x329   : > { %s3330_s11 = scalar_lea.vmem %s3329_s30, 2048  ;;  %p3331_p11 = scmp.lt.s32.totalorder %s3984_s29, %s3329_s30 }
 0x32a   : > { %p3326_p8 = pnand %p3325_p5, %p4093_p2  ;;  %p3332_p12 = scmp.lt.s32.totalorder %s3330_s11, %s3324_s10 }
 0x32b   : > { %s3982_s5 = scalar_lea.hbm %s4094_s8, %s2763_s17 }
 0x32c   : > { %p3327_p7 = pneg %p3326_p8  ;;  %p3333_p6 = por %p3332_p12, %p3331_p11 }
 0x32e   : > { %p3334_p3 = pnand %p3333_p6, %p3327_p7 }
 0x37c   : > { %v1850_v6 = vpop.permute.xlu0 %1849  ;;  %v1857_v7 = vpop.permute.xlu1 %1856 }
 0x37d   : > { %v2046_v8 = vadd.f32 %v2045_v52, %v1857_v7 }
 0x37f   : > { %2488 = vst.msk [vmem:[%s3961_s23 + $0x8] sm:$0xff] %vm1126_vm7, %v2046_v8 }
 0x380   : > { %v1871_v9 = vpop.permute.xlu0 %1870  ;;  %v1864_v15 = vpop.permute.xlu1 %1863 }
 0x381   : > { %v2192_v10 = vadd.f32 %v2191_v57, %v1871_v9 }
 0x383   : > { %2490 = vst.msk [vmem:[%s3961_s23 + $0x18] sm:$0xff] %vm1126_vm7, %v2192_v10 }
 0x384   : > { %v1885_v11 = vpop.permute.xlu0 %1884  ;;  %v1878_v21 = vpop.permute.xlu1 %1877 }
 0x385   : > { %v2338_v12 = vadd.f32 %v2337_v63, %v1885_v11 }
 0x387   : > { %2492 = vst.msk [vmem:[%s3961_s23 + $0x28] sm:$0xff] %vm1126_vm7, %v2338_v12 }
 0x388   : > { %v1899_v13 = vpop.permute.xlu0 %1898  ;;  %v1892_v26 = vpop.permute.xlu1 %1891 }
 0x389   : > { %v2484_v14 = vadd.f32 %v2483_v4, %v1899_v13 }
 0x38b   : > { %2494 = vst.msk [vmem:[%s3961_s23 + $0x38] sm:$0xff] %vm1126_vm7, %v2484_v14 }
 0x3b8   : > { %v1972_v16 = vpop.f32.mrf.mxu0 }
 0x3b9   : > { %v1973_v17 = vadd.f32 %v1972_v16, %v1850_v6 }
 0x3ba   : > { %v2958_v18 = vpop.f32.mrf.mxu0 }
 0x3bb   : > { %2487 = vst.msk [vmem:[%s3961_s23] sm:$0xff] %vm1126_vm7, %v1973_v17 }
 0x3bc   : > { %v2118_v19 = vpop.f32.mrf.mxu0 }
 0x3bd   : > { %v2119_v20 = vadd.f32 %v2118_v19, %v1864_v15 }
 0x3be   : > { %v2968_v22 = vpop.f32.mrf.mxu0 }
 0x3bf   : > { %2489 = vst.msk [vmem:[%s3961_s23 + $0x10] sm:$0xff] %vm1126_vm7, %v2119_v20 }
 0x3c0   : > { %v2264_v23 = vpop.f32.mrf.mxu0 }
 0x3c1   : > { %v2265_v24 = vadd.f32 %v2264_v23, %v1878_v21 }
 0x3c2   : > { %v2978_v25 = vpop.f32.mrf.mxu0 }
 0x3c3   : > { %2491 = vst.msk [vmem:[%s3961_s23 + $0x20] sm:$0xff] %vm1126_vm7, %v2265_v24 }
 0x3c4   : > { %v2410_v27 = vpop.f32.mrf.mxu0 }
 0x3c5   : > { %v2411_v28 = vadd.f32 %v2410_v27, %v1892_v26 }
 0x3c6   : > { %v2988_v29 = vpop.f32.mrf.mxu0 }
 0x3c7   : > { %2493 = vst.msk [vmem:[%s3961_s23 + $0x30] sm:$0xff] %vm1126_vm7, %v2411_v28 }
 0x3c8   : > { %3337 = shalt.err (!%p3334_p3)
}
 0x3c9   : > { %s3338_s28 = scalar_lea.hbm %s3982_s5, 1024  ;;  %s3342_s23 = scalar_lea.hbm %s4094_s8, 2048 }
 0x3ca   : > { %p3339_p9 = scmp.ne.s32.totalorder %s3982_s5, %s3338_s28  ;;  %p3343_p10 = scmp.lt.s32.totalorder %s3982_s5, %s4094_s8 }
 0x3cb   : > { %p3344_p13 = scmp.lt.s32.totalorder %s3342_s23, %s3338_s28 }
 0x3cc   : > { %p3340_p4 = pnand %p3339_p9, %p4093_p2 }
 0x3cd   : > { %p3345_p0 = por %p3344_p13, %p3343_p10 }
 0x3ce   : > { %p3341_p1 = pneg %p3340_p4 }
 0x3d0   : > { %p3346_p5 = pnand %p3345_p0, %p3341_p1 }
 0x3d2   : > { %3349 = shalt.err (!%p3346_p5)
}
 0x3d3   : > { %s3420_s7 = smov 128   ;;  %s3421_s10 = smov 8  }
 0x3d4   : > { %3021 = dma.vmem_to_hbm [thread:$0]  (%p4093_p2), %s3984_s29, 1024, %s3982_s5, %s2501_s27, %s3420_s7, %s3420_s7, %s3421_s10  }
 0x3d5 PF: > { %s2542_s18 = sand.u32 1, %s3392_s21   ;;  %p4095_p8 = scmp.ne.s32.totalorder %s4081_s16, 0 }
 0x3d6   : > { %p4096_p7 = scmp.ge.s32.totalorder %s3404_s24, 2  ;;  %s2543_s30 = scalar_lea.sflag [#allocation4], %s2542_s18 }
 0x3d8   : > { %p3048_p11 = pnand %p4096_p7, %p4095_p8 }
 0x3da   : > { %p3049_p12 = pneg %p3048_p11 }
 0x3dc   : > { %3383 = dma.done.wait (%p3049_p12), %s2543_s30, 128  }
 0x3dd   : > { %3385 = vsyncadd (%p3049_p12), %s2543_s30, 4294967168  ;;  %s2552_s11 = scalar_lea.sflag [#allocation16], %s2542_s18 }
 0x3de   : > { %3387 = dma.done.wait (%p3049_p12), %s2552_s11, 1024  }
 0x3df   : > { %3389 = vsyncadd (%p3049_p12), %s2552_s11, 4294966272  ;;  %s4097_s24 = sld [smem:[#allocation24_spill]]  ;;  %s4100_s21 = smov %s3396_s22 }
 0x3e0   : > { %s4098_s25 = sld [smem:[#allocation23_spill]] }
 0x3e1   : > { %s4099_s23 = sld [smem:[#allocation25_spill]] }
 0x3e5   : > { %p36_p2 = scmp.ge.s32.totalorder %s4097_s24, 4  }
 0x3e6   : > { %s4101_s22 = smov %s4098_s25 }
 0x3e7   :  { %38 = sbr.rel (!%p36_p2) target bundleno = 20 (0x14), region = 166 }
 0x3ec   :  { %2557 = vsyncpa [#allocation3], 1 }
 0x3ed   :  { %2559 = vsyncpa [#allocation3 + $0x1], 1 }
 0x3ee   :  { %2560 = vsyncpa [#allocation6], 1 }
 0x3ef   :  { %2561 = vsyncpa [#allocation9], 1 }
 0x3f0   :  { %2562 = vsyncpa [#allocation12], 1 }
 0x3f1   :  { %2563 = vsyncpa [#allocation4], 1 }
 0x3f2   :  { %2565 = vsyncpa [#allocation4 + $0x1], 1 }
 0x3f3   :  { %2566 = vsyncpa [#allocation16], 1 }
 0x3f4   :  { %2568 = vsyncpa [#allocation16 + $0x1], 1 }

</bundles_post_ra>
